<compile_context>
chip_gen: v7x
topology: tpu7x:2x2x1
jax: 0.10.0
libtpu: 0.0.40
codegen_flags: <defaults>
</compile_context>

<pallas_src>
import jax
import jax.numpy as jnp
from jax import lax
from jax.experimental import pallas as pl
from jax.experimental.pallas import tpu as pltpu

EPS = 1e-5  # nn.BatchNorm2d default


def _round_up(x, m):
    return (x + m - 1) // m * m


def _vmem_budget_bytes():
    """~75% of per-core VMEM (v5e/v6e: 128->96 MiB, v7x: 64->48 MiB), leaving
    headroom for compiler-internal scratch."""
    cap = 64 << 20  # conservative fallback (v7x per-core physical VMEM)
    try:
        info = pltpu.get_tpu_info()
        cap = int(getattr(info, "vmem_capacity_bytes", cap) or cap)
    except Exception:
        pass
    return (cap * 3) // 4


def _conv_stats_kernel(p_ref, w_ref, y_ref, stats_ref):
    """Single-K-tile case (weight resident in VMEM).

    p_ref:    (tm, K)      bf16 tap-patch tile
    w_ref:    (K, 4*C4)    bf16 combined phase weight (constant block index)
    y_ref:    (tm, 4*C4)   bf16 conv output tile
    stats_ref:(2, 4*C4)    f32 per-chunk (sum, sumsq)
    """
    acc = jnp.dot(p_ref[...], w_ref[...], preferred_element_type=jnp.float32)
    y_ref[...] = acc.astype(y_ref.dtype)
    stats_ref[0:1, :] = jnp.sum(acc, axis=0, keepdims=True)
    stats_ref[1:2, :] = jnp.sum(acc * acc, axis=0, keepdims=True)


def _conv_stats_kernel_ksplit(p_ref, w_ref, y_ref, stats_ref, acc_ref):
    """Fallback for very large K: accumulate over the (last) K grid axis."""
    k = pl.program_id(1)

    @pl.when(k == 0)
    def _():
        acc_ref[...] = jnp.zeros_like(acc_ref)

    acc_ref[...] += jnp.dot(p_ref[...], w_ref[...],
                            preferred_element_type=jnp.float32)

    @pl.when(k == pl.num_programs(1) - 1)
    def _():
        acc = acc_ref[...]
        y_ref[...] = acc.astype(y_ref.dtype)
        stats_ref[0:1, :] = jnp.sum(acc, axis=0, keepdims=True)
        stats_ref[1:2, :] = jnp.sum(acc * acc, axis=0, keepdims=True)


def _bn_relu_kernel(y_ref, scale_ref, shift_ref, o_ref):
    """o = max(y * scale + shift, 0); scale/shift already fold BN + affine."""
    y = y_ref[...].astype(jnp.float32)
    o_ref[...] = jnp.maximum(y * scale_ref[...] + shift_ref[...], 0.0
                             ).astype(o_ref.dtype)


def up_forward(x, w_t, gamma, beta, *, tm=None, tk_max=2048):
    """x: (N, C_in, H, W) NCHW.  w_t: (C_in, C_out, 3, 3) ConvTranspose2d layout."""
    N, C_in, H, W = x.shape
    C_out = w_t.shape[1]
    OH, OW = 2 * H, 2 * W

    C4 = _round_up(C_out, 128)      # lane-dense output channels
    CW = 4 * C4                     # 4 sub-pixel phases side by side
    M = N * H * W                   # input-resolution pixel count
    K = 4 * C_in                    # 4 shifted taps of the un-dilated input

    budget = _vmem_budget_bytes()

    # ---- K tiling: keep the combined weight resident whenever it fits in
    #      ~half the budget; otherwise split K (pad K so tk always divides). ----
    w_total_bytes = K * CW * 2
    if w_total_bytes <= budget // 2:
        tk, Kp, num_k = K, K, 1
    else:
        tk = max(128, min(tk_max, ((budget // 4) // (CW * 2)) // 128 * 128))
        Kp = _round_up(K, tk)
        num_k = Kp // tk

    w_block_bytes = tk * CW * 2
    single_buffer_w = (num_k == 1 and w_block_bytes >= (4 << 20))
    w_bufs = 1 if single_buffer_w else 2

    # ---- pixel-tile size tm: as large as VMEM allows, but keep num_m >= 2 so
    #      both TensorCores (megacore / v7x) get grid work. ----
    row_bytes = 2 * (tk * 2) + 2 * (CW * 2) + (CW * 4 if num_k > 1 else 0)
    fixed_bytes = w_bufs * w_block_bytes + 2 * 2 * CW * 4 + (2 << 20)
    tm_cap = max(8, (budget - fixed_bytes) // row_bytes)
    tm_req = 1024 if tm is None else tm
    half_m = _round_up(max(-(-M // 2), 8), 8)
    tm = max(8, (min(tm_req, tm_cap, half_m) // 8) * 8)
    Mp = _round_up(M, tm)           # padded rows are zeros -> zero stats
    num_m = Mp // tm

    # ---- glue: 4 shifted taps of the un-dilated input (NHWC), flat (Mp, Kp) ----
    # TODO(synk): the tap array duplicates x 4x in HBM; building taps in-kernel
    # from a single padded x (halo row via a 1-row BlockSpec) would halve
    # input-side traffic but needs unaligned in-kernel shifts.
    x_nhwc = jnp.transpose(x, (0, 2, 3, 1))
    xp = jnp.pad(x_nhwc, ((0, 0), (0, 1), (0, 1), (0, 0)))
    taps = jnp.concatenate(
        [xp[:, :H, :W, :], xp[:, :H, 1:W + 1, :],
         xp[:, 1:H + 1, :W, :], xp[:, 1:H + 1, 1:W + 1, :]], axis=-1)
    patches = taps.reshape(M, K).astype(jnp.bfloat16)
    patches = jnp.pad(patches, ((0, Mp - M), (0, Kp - K)))

    # ---- glue: combined sub-pixel weight (Kp, CW) ----
    # f = flipped kernel of the equivalent regular conv on the dilated input.
    f = w_t[:, :, ::-1, ::-1]
    z = jnp.zeros((C_in, C4), w_t.dtype)

    def blk(kh, kw):
        return jnp.pad(f[:, :, kh, kw], ((0, 0), (0, C4 - C_out)))

    # row blocks = taps [x(p,q), x(p,q+1), x(p+1,q), x(p+1,q+1)]
    # col blocks = phases [(0,0), (0,1), (1,0), (1,1)]
    wc = jnp.concatenate([
        jnp.concatenate([blk(1, 1), blk(1, 0), blk(0, 1), blk(0, 0)], axis=1),
        jnp.concatenate([z,         blk(1, 2), z,         blk(0, 2)], axis=1),
        jnp.concatenate([z,         z,         blk(2, 1), blk(2, 0)], axis=1),
        jnp.concatenate([z,         z,         z,         blk(2, 2)], axis=1),
    ], axis=0).astype(jnp.bfloat16)
    wc = jnp.pad(wc, ((0, Kp - K), (0, 0)))

    # ---- Pallas kernel 1: sub-pixel conv matmul + per-chunk channel stats ----
    out_shape1 = [jax.ShapeDtypeStruct((Mp, CW), jnp.bfloat16),
                  jax.ShapeDtypeStruct((num_m, 2, CW), jnp.float32)]

    if num_k == 1:
        w_kwargs = dict(pipeline_mode=pl.Buffered(1)) if single_buffer_w else {}
        vmem1 = (w_bufs * w_block_bytes + 2 * tm * Kp * 2 + 2 * tm * CW * 2
                 + 2 * 2 * CW * 4)
        vmem1 = int(min(budget, max(vmem1 * 5 // 4 + (2 << 20), 4 << 20)))
        conv_out, stats_part = pl.pallas_call(
            _conv_stats_kernel,
            grid=(num_m,),
            in_specs=[
                pl.BlockSpec((tm, Kp), lambda i: (i, 0)),
                pl.BlockSpec((Kp, CW), lambda i: (0, 0), **w_kwargs),
            ],
            out_specs=[
                pl.BlockSpec((tm, CW), lambda i: (i, 0)),
                pl.BlockSpec((None, 2, CW), lambda i: (i, 0, 0)),
            ],
            out_shape=out_shape1,
            compiler_params=pltpu.CompilerParams(
                dimension_semantics=("parallel",),
                vmem_limit_bytes=vmem1),
        )(patches, wc)
    else:
        vmem1 = (2 * w_block_bytes + 2 * tm * tk * 2 + 2 * tm * CW * 2
                 + tm * CW * 4 + 2 * 2 * CW * 4)
        vmem1 = int(min(budget, max(vmem1 * 5 // 4 + (2 << 20), 4 << 20)))
        conv_out, stats_part = pl.pallas_call(
            _conv_stats_kernel_ksplit,
            grid=(num_m, num_k),
            in_specs=[
                pl.BlockSpec((tm, tk), lambda i, k: (i, k)),
                pl.BlockSpec((tk, CW), lambda i, k: (k, 0)),
            ],
            out_specs=[
                pl.BlockSpec((tm, CW), lambda i, k: (i, 0)),
                pl.BlockSpec((None, 2, CW), lambda i, k: (i, 0, 0)),
            ],
            out_shape=out_shape1,
            scratch_shapes=[pltpu.VMEM((tm, CW), jnp.float32)],
            compiler_params=pltpu.CompilerParams(
                dimension_semantics=("parallel", "arbitrary"),
                vmem_limit_bytes=vmem1),
        )(patches, wc)

    # ---- glue: reduce partial stats, fold BN into per-channel scale/shift ----
    # NOTE: E[x^2] - E[x]^2 in f32; fine for conv activations (|mean| ~ std).
    sums = jnp.sum(stats_part, axis=0).reshape(2, 4, C4).sum(axis=1)   # (2, C4)
    m_total = float(N * OH * OW)
    mean = sums[0] / m_total
    var = jnp.maximum(sums[1] / m_total - mean * mean, 0.0)
    gamma_p = jnp.pad(gamma.astype(jnp.float32), (0, C4 - C_out))
    beta_p = jnp.pad(beta.astype(jnp.float32), (0, C4 - C_out))
    scale_c = gamma_p * lax.rsqrt(var + EPS)
    shift_c = beta_p - mean * scale_c
    scale = jnp.tile(scale_c, 4).reshape(1, CW)     # one copy per phase block
    shift = jnp.tile(shift_c, 4).reshape(1, CW)

    # ---- Pallas kernel 2: fused BN(scale,shift) + ReLU (bf16 out, in-place) ----
    vmem2 = 2 * (2 * tm * CW * 2) + 2 * 2 * CW * 4
    vmem2 = int(min(budget, max(vmem2 * 5 // 4 + (2 << 20), 4 << 20)))
    y_flat = pl.pallas_call(
        _bn_relu_kernel,
        grid=(num_m,),
        in_specs=[
            pl.BlockSpec((tm, CW), lambda i: (i, 0)),
            pl.BlockSpec((1, CW), lambda i: (0, 0)),
            pl.BlockSpec((1, CW), lambda i: (0, 0)),
        ],
        out_specs=pl.BlockSpec((tm, CW), lambda i: (i, 0)),
        out_shape=jax.ShapeDtypeStruct((Mp, CW), jnp.bfloat16),
        input_output_aliases={0: 0},
        compiler_params=pltpu.CompilerParams(
            dimension_semantics=("parallel",),
            vmem_limit_bytes=vmem2),
    )(conv_out, scale, shift)

    # ---- glue: sub-pixel shuffle back to NCHW (single fused XLA copy pass) ----
    y = y_flat[:M].reshape(N, H, W, 2, 2, C4)
    y = jnp.transpose(y, (0, 1, 3, 2, 4, 5)).reshape(N, OH, OW, C4)[..., :C_out]
    return jnp.transpose(y, (0, 3, 1, 2)).astype(jnp.float32)


def up_reference(x, w_t, gamma, beta):
    """Pure-JAX f32 reference (XLA dilated conv) for correctness checking."""
    w_flip = jnp.transpose(w_t[:, :, ::-1, ::-1], (1, 0, 2, 3))  # (C_out, C_in, 3, 3)
    conv = lax.conv_general_dilated(
        x, w_flip, window_strides=(1, 1), padding=[(1, 2), (1, 2)],
        lhs_dilation=(2, 2), dimension_numbers=("NCHW", "OIHW", "NCHW"),
        precision=lax.Precision.HIGHEST)
    mean = jnp.mean(conv, axis=(0, 2, 3), keepdims=True)
    var = jnp.mean((conv - mean) ** 2, axis=(0, 2, 3), keepdims=True)
    yhat = (conv - mean) * lax.rsqrt(var + EPS)
    return jnp.maximum(yhat * gamma.reshape(1, -1, 1, 1)
                       + beta.reshape(1, -1, 1, 1), 0.0)


if __name__ == "__main__":
    key = jax.random.PRNGKey(0)
    k1, k2, k3, k4 = jax.random.split(key, 4)

    N, C_in, H, W = 2, 4, 16, 16
    C_out = 8

    x = jax.random.normal(k1, (N, C_in, H, W), jnp.float32)
    w_t = jax.random.normal(k2, (C_in, C_out, 3, 3), jnp.float32) * 0.1
    gamma = 1.0 + 0.1 * jax.random.normal(k3, (C_out,), jnp.float32)
    beta = 0.1 * jax.random.normal(k4, (C_out,), jnp.float32)

    y = jax.block_until_ready(jax.jit(up_forward)(x, w_t, gamma, beta))
    y_ref = up_reference(x, w_t, gamma, beta)

    assert y.shape == (N, C_out, 2 * H, 2 * W), y.shape
    # bf16 MXU operands + bf16 conv/output intermediates (f32 accumulation)
    max_err = float(jnp.max(jnp.abs(y - y_ref)))
    assert jnp.allclose(y, y_ref, atol=2e-2, rtol=2e-2), f"mismatch {max_err}"
    print("KERNEL_OK")
</pallas_src>

<mosaic_0001>
module attributes {stable_mosaic.version = 11 : i64} {
  func.func @_conv_stats_kernel(%arg0: i32, %arg1: memref<256x16xbf16, #tpu.memory_space<vmem>>, %arg2: memref<16x512xbf16, #tpu.memory_space<vmem>>, %arg3: memref<256x512xbf16, #tpu.memory_space<vmem>>, %arg4: memref<1x2x512xf32, #tpu.memory_space<vmem>>) attributes {dimension_semantics = [#tpu.dimension_semantics<parallel>], iteration_bounds = array<i64: 2>, scalar_prefetch = 0 : i64, scratch_operands = 0 : i64, tpu.core_type = #tpu.core_type<tc>, window_params = [{transform_indices = @transform_0, window_bounds = array<i64: 256, 16>}, {pipeline_mode = #tpu.pipeline_mode<synchronous>, transform_indices = @transform_1, window_bounds = array<i64: 16, 512>}, {transform_indices = @transform_2, window_bounds = array<i64: 256, 512>}, {transform_indices = @transform_3, window_bounds = array<i64: 1, 2, 512>}]} {
    %c0 = arith.constant 0 : index
    %c0_0 = arith.constant 0 : index
    %0 = vector.load %arg1[%c0, %c0_0] : memref<256x16xbf16, #tpu.memory_space<vmem>>, vector<256x16xbf16>
    %c0_1 = arith.constant 0 : index
    %c0_2 = arith.constant 0 : index
    %1 = vector.load %arg2[%c0_1, %c0_2] : memref<16x512xbf16, #tpu.memory_space<vmem>>, vector<16x512xbf16>
    %cst = arith.constant dense<0.000000e+00> : vector<256x512xf32>
    %2 = tpu.matmul %0, %1, %cst {dimension_numbers = #tpu.dot_dimension_numbers<[1], [0], [0], [1], [0, 0, 1, 1], [], []>} : vector<256x16xbf16>, vector<16x512xbf16>, vector<256x512xf32> -> vector<256x512xf32>
    %3 = arith.truncf %2 : vector<256x512xf32> to vector<256x512xbf16>
    %c0_3 = arith.constant 0 : index
    %c0_4 = arith.constant 0 : index
    %4 = vector.load %arg3[%c0_3, %c0_4] : memref<256x512xbf16, #tpu.memory_space<vmem>>, vector<256x512xbf16>
    tpu.vector_store %arg3[%c0_3, %c0_4], %3 {strides = array<i32>} : memref<256x512xbf16, #tpu.memory_space<vmem>>, vector<256x512xbf16>,
    %cst_5 = arith.constant dense<0.000000e+00> : vector<512xf32>
    %5 = vector.multi_reduction <add>, %2, %cst_5 [0] : vector<256x512xf32> to vector<512xf32>
    %6 = vector.shape_cast %5 : vector<512xf32> to vector<1x512xf32>
    %c0_6 = arith.constant 0 : index
    %c0_7 = arith.constant 0 : index
    %c0_8 = arith.constant 0 : index
    %7 = vector.load %arg4[%c0_6, %c0_7, %c0_8] : memref<1x2x512xf32, #tpu.memory_space<vmem>>, vector<1x1x512xf32>
    %8 = vector.shape_cast %7 : vector<1x1x512xf32> to vector<1x512xf32>
    %9 = vector.shape_cast %6 : vector<1x512xf32> to vector<1x1x512xf32>
    tpu.vector_store %arg4[%c0_6, %c0_7, %c0_8], %9 {strides = array<i32>} : memref<1x2x512xf32, #tpu.memory_space<vmem>>, vector<1x1x512xf32>,
    %10 = arith.mulf %2, %2 : vector<256x512xf32>
    %cst_9 = arith.constant dense<0.000000e+00> : vector<512xf32>
    %11 = vector.multi_reduction <add>, %10, %cst_9 [0] : vector<256x512xf32> to vector<512xf32>
    %12 = vector.shape_cast %11 : vector<512xf32> to vector<1x512xf32>
    %c0_10 = arith.constant 0 : index
    %c1 = arith.constant 1 : index
    %c0_11 = arith.constant 0 : index
    %13 = vector.load %arg4[%c0_10, %c1, %c0_11] : memref<1x2x512xf32, #tpu.memory_space<vmem>>, vector<1x1x512xf32>
    %14 = vector.shape_cast %13 : vector<1x1x512xf32> to vector<1x512xf32>
    %15 = vector.shape_cast %12 : vector<1x512xf32> to vector<1x1x512xf32>
    tpu.vector_store %arg4[%c0_10, %c1, %c0_11], %15 {strides = array<i32>} : memref<1x2x512xf32, #tpu.memory_space<vmem>>, vector<1x1x512xf32>,
    return
  }
  func.func @transform_0(%arg0: i32) -> (i32, i32) {
    %c0_i32 = arith.constant 0 : i32
    %c0_i32_0 = arith.constant 0 : i32
    return %arg0, %c0_i32 : i32, i32
  }
  func.func @transform_1(%arg0: i32) -> (i32, i32) {
    %c0_i32 = arith.constant 0 : i32
    %c0_i32_0 = arith.constant 0 : i32
    %c0_i32_1 = arith.constant 0 : i32
    return %c0_i32, %c0_i32_0 : i32, i32
  }
  func.func @transform_2(%arg0: i32) -> (i32, i32) {
    %c0_i32 = arith.constant 0 : i32
    %c0_i32_0 = arith.constant 0 : i32
    return %arg0, %c0_i32 : i32, i32
  }
  func.func @transform_3(%arg0: i32) -> (i32, i32, i32) {
    %c0_i32 = arith.constant 0 : i32
    %c0_i32_0 = arith.constant 0 : i32
    %c0_i32_1 = arith.constant 0 : i32
    return %arg0, %c0_i32, %c0_i32_0 : i32, i32, i32
  }
}

module attributes {stable_mosaic.version = 11 : i64} {
  func.func @_bn_relu_kernel(%arg0: i32, %arg1: memref<256x512xbf16, #tpu.memory_space<vmem>>, %arg2: memref<1x512xf32, #tpu.memory_space<vmem>>, %arg3: memref<1x512xf32, #tpu.memory_space<vmem>>, %arg4: memref<256x512xbf16, #tpu.memory_space<vmem>>) attributes {dimension_semantics = [#tpu.dimension_semantics<parallel>], iteration_bounds = array<i64: 2>, scalar_prefetch = 0 : i64, scratch_operands = 0 : i64, tpu.core_type = #tpu.core_type<tc>, window_params = [{transform_indices = @transform_0, window_bounds = array<i64: 256, 512>}, {pipeline_mode = #tpu.pipeline_mode<synchronous>, transform_indices = @transform_1, window_bounds = array<i64: 1, 512>}, {pipeline_mode = #tpu.pipeline_mode<synchronous>, transform_indices = @transform_2, window_bounds = array<i64: 1, 512>}, {transform_indices = @transform_3, window_bounds = array<i64: 256, 512>}]} {
    %c0 = arith.constant 0 : index
    %c0_0 = arith.constant 0 : index
    %0 = vector.load %arg1[%c0, %c0_0] : memref<256x512xbf16, #tpu.memory_space<vmem>>, vector<256x512xbf16>
    %1 = arith.extf %0 : vector<256x512xbf16> to vector<256x512xf32>
    %c0_1 = arith.constant 0 : index
    %c0_2 = arith.constant 0 : index
    %2 = vector.load %arg2[%c0_1, %c0_2] : memref<1x512xf32, #tpu.memory_space<vmem>>, vector<1x512xf32>
    %3 = vector.broadcast %2 : vector<1x512xf32> to vector<256x512xf32>
    %4 = arith.mulf %1, %3 : vector<256x512xf32>
    %c0_3 = arith.constant 0 : index
    %c0_4 = arith.constant 0 : index
    %5 = vector.load %arg3[%c0_3, %c0_4] : memref<1x512xf32, #tpu.memory_space<vmem>>, vector<1x512xf32>
    %6 = vector.broadcast %5 : vector<1x512xf32> to vector<256x512xf32>
    %7 = arith.addf %4, %6 : vector<256x512xf32>
    %cst = arith.constant 0.000000e+00 : f32
    %8 = vector.broadcast %cst : f32 to vector<256x512xf32>
    %9 = arith.maximumf %7, %8 : vector<256x512xf32>
    %10 = arith.truncf %9 : vector<256x512xf32> to vector<256x512xbf16>
    %c0_5 = arith.constant 0 : index
    %c0_6 = arith.constant 0 : index
    %11 = vector.load %arg4[%c0_5, %c0_6] : memref<256x512xbf16, #tpu.memory_space<vmem>>, vector<256x512xbf16>
    tpu.vector_store %arg4[%c0_5, %c0_6], %10 {strides = array<i32>} : memref<256x512xbf16, #tpu.memory_space<vmem>>, vector<256x512xbf16>,
    return
  }
  func.func @transform_0(%arg0: i32) -> (i32, i32) {
    %c0_i32 = arith.constant 0 : i32
    %c0_i32_0 = arith.constant 0 : i32
    return %arg0, %c0_i32 : i32, i32
  }
  func.func @transform_1(%arg0: i32) -> (i32, i32) {
    %c0_i32 = arith.constant 0 : i32
    %c0_i32_0 = arith.constant 0 : i32
    %c0_i32_1 = arith.constant 0 : i32
    return %c0_i32, %c0_i32_0 : i32, i32
  }
  func.func @transform_2(%arg0: i32) -> (i32, i32) {
    %c0_i32 = arith.constant 0 : i32
    %c0_i32_0 = arith.constant 0 : i32
    %c0_i32_1 = arith.constant 0 : i32
    return %c0_i32, %c0_i32_0 : i32, i32
  }
  func.func @transform_3(%arg0: i32) -> (i32, i32) {
    %c0_i32 = arith.constant 0 : i32
    %c0_i32_0 = arith.constant 0 : i32
    return %arg0, %c0_i32 : i32, i32
  }
}

</mosaic_0001>

<bundles_post_ra>
// kernel: tile.18
= control target key start
LH: loop header
LB: loop body
LE: loop exit
PB: predicated region body
PF: predicated region fallthrough
CT: control target
= control target key end

     0   :  { %s22_s0 = inlined_call_operand.vmem [shape: f32[128], index: 0, kind: input, shape index: {}]   ;;  %s23_s1 = inlined_call_operand.vmem [shape: f32[4,128], index: 1, kind: output, shape index: {}]  }
   0x1   :  { %v4_v0 = vld [vmem:[%s22_s0] ss:$0 sm:$0xff] }
   0x2   :  { %5 = vst [vmem:[%s23_s1] sm:$0xf] %v4_v0 }

// kernel: up_forward.2
= control target key start
LH: loop header
LB: loop body
LE: loop exit
PB: predicated region body
PF: predicated region fallthrough
CT: control target
= control target key end

     0   :  { %s2048_s12 = smov 0   ;;  %s2249_s0 = inlined_call_operand.vmem [shape: bf16[512,16], index: 0, kind: input, shape index: {}]   ;;  %s2250_s1 = inlined_call_operand.vmem [shape: bf16[16,512], index: 1, kind: input, shape index: {}]   ;;  %s2251_s2 = inlined_call_operand.vmem [shape: bf16[512,512], index: 2, kind: output, shape index: {0}]   ;;  %s2252_s3 = inlined_call_operand.vmem [shape: f32[2,2,512], index: 3, kind: output, shape index: {1}]  }
   0x1 LB: > { %s2054_s13 = sadd.s32 4294967295, %s2024_s12   ;;  %p1793_p0 = scmp.ge.s32.totalorder %s2024_s12, 1  ;;  %s2024_s12 = sphi %s2048_s12, %s14_s12  }
   0x2   : > { %p141_p1 = scmp.lt.s32.totalorder %s2024_s12, 3 }
   0x4   : > { %p142_p2 = pnand %p1793_p0, %p141_p1 }
   0x5   : > { %v1996_v0 = vld [vmem:[%s2250_s1 + $0x4] ss:$16 sps:$4 sm:$0xff] (!%p142_p2)   ;;  %s1794_s16 = sshll.u32 (!%p142_p2), %s2054_s13, 5  ;;  %v1998_v1 = vld [vmem:[%s2250_s1 + $0xc] ss:$16 sps:$4 sm:$0xff] (!%p142_p2)   ;;  %v2026_v2 = vmov (!%p142_p2), 0  }
   0x6   : > { %145 = sbr.rel (%p142_p2) target bundleno = 382 (0x17e), region = 28  ;;  %407 = vmatprep.mubr.bf16.mxu0 (!%p142_p2), %v2026_v2  ;;  %600 = vmatprep.mubr.bf16.mxu1 (!%p142_p2), %v2026_v2  ;;  %p172_p3 = scmp.lt.s32.totalorder (!%p142_p2), %s1794_s16, 63  ;;  %v2000_v3 = vld [vmem:[%s2250_s1] ss:$16 sps:$4 sm:$0xff] (!%p142_p2)   ;;  %v2001_v4 = vld [vmem:[%s2250_s1 + $0x8] ss:$16 sps:$4 sm:$0xff] (!%p142_p2)  }
   0x7   : > { %375 = vmatprep.subr.bf16.mxu0 (!%p142_p2), %v1996_v0  ;;  %568 = vmatprep.subr.bf16.mxu1 (!%p142_p2), %v1998_v1  ;;  %vm326_vm0 = vcmask (!%p142_p2), 130048   ;;  %p184_p4 = scmp.lt.s32.totalorder (!%p142_p2), %s2054_s13, 1 }
   0x8   : > { %376 = vmatpush1.bf16.msra.mxu0 (!%p142_p2), %v2000_v3  ;;  %569 = vmatpush1.bf16.msra.mxu1 (!%p142_p2), %v2001_v4 }
   0xd   : > { %s2254_s16 = smov (!%p172_p3, %s1794_s16), 63  ;;  %s2256_s13 = smov (!%p184_p4, %s2054_s13), 1 }
   0xe   : > { %s1795_s23 = sshll.u32 %s2254_s16, 2  ;;  %s1920_s27 = sshll.u32 %s2254_s16, 4 }
   0xf   : > { %s2079_s26 = scalar_lea.vmem %s2249_s0, %s1795_s23  ;;  %s2163_s30 = scalar_lea.vmem %s2251_s2, %s1920_s27 }
  0x10   : > { %v2002_v5 = vld [vmem:[%s2079_s26] sm:$0xff]   ;;  %v2003_v6 = vld [vmem:[%s2079_s26 + $0x8] sm:$0xff]   ;;  %v2004_v7 = vld [vmem:[%s2079_s26 + $0x10] sm:$0xff]   ;;  %s1921_s4 = sshll.u32 %s2256_s13, 3 }
  0x11   : > { %1821 = vmatmul.mubr.msk.bf16.vlgmr.msra.gmra.mrb[0].mxu0 %vm326_vm0, %v2002_v5  ;;  %1837 = vmatmul.mubr.msk.bf16.vlgmr.msra.gmra.mrb[0].mxu1 %vm326_vm0, %v2002_v5  ;;  %v2005_v8 = vld [vmem:[%s2079_s26 + $0x18] sm:$0xff]   ;;  %v2006_v9 = vld [vmem:[%s2079_s26 + $0x20] sm:$0xff]   ;;  %v2007_v10 = vld [vmem:[%s2079_s26 + $0x28] sm:$0xff]   ;;  %s188_s7 = scalar_lea.vmem %s2252_s3, %s1921_s4 }
  0x12   : > { %417 = vmatprep.mubr.bf16.mxu0 %v2026_v2  ;;  %610 = vmatprep.mubr.bf16.mxu1 %v2026_v2  ;;  %v2008_v11 = vld [vmem:[%s2079_s26 + $0x30] sm:$0xff]   ;;  %v2009_v12 = vld [vmem:[%s2079_s26 + $0x38] sm:$0xff]   ;;  %v2010_v13 = vld [vmem:[%s2079_s26 + $0x40] sm:$0xff]  }
  0x13   : > { %v2011_v14 = vld [vmem:[%s2079_s26 + $0x48] sm:$0xff]   ;;  %v2012_v15 = vld [vmem:[%s2079_s26 + $0x50] sm:$0xff]   ;;  %v2013_v16 = vld [vmem:[%s2079_s26 + $0x58] sm:$0xff]  }
  0x14   : > { %v2014_v17 = vld [vmem:[%s2079_s26 + $0x60] sm:$0xff]   ;;  %v2015_v18 = vld [vmem:[%s2079_s26 + $0x68] sm:$0xff]   ;;  %v2016_v19 = vld [vmem:[%s2079_s26 + $0x70] sm:$0xff]  }
  0x15   : > { %v2017_v20 = vld [vmem:[%s2079_s26 + $0x78] sm:$0xff]  }
  0x19   : > { %1822 = vmatmul.mubr.msk.bf16.gmra.mrb[4].mxu0 %vm326_vm0, %v2003_v6  ;;  %1838 = vmatmul.mubr.msk.bf16.gmra.mrb[4].mxu1 %vm326_vm0, %v2003_v6 }
  0x1a   : > { %427 = vmatprep.mubr.bf16.mxu0 %v2026_v2  ;;  %620 = vmatprep.mubr.bf16.mxu1 %v2026_v2 }
  0x21   : > { %1823 = vmatmul.mubr.msk.bf16.gmra.mrb[8].mxu0 %vm326_vm0, %v2004_v7  ;;  %1839 = vmatmul.mubr.msk.bf16.gmra.mrb[8].mxu1 %vm326_vm0, %v2004_v7 }
  0x22   : > { %437 = vmatprep.mubr.bf16.mxu0 %v2026_v2  ;;  %630 = vmatprep.mubr.bf16.mxu1 %v2026_v2 }
  0x29   : > { %1824 = vmatmul.mubr.msk.bf16.gmra.mrb[12].mxu0 %vm326_vm0, %v2005_v8  ;;  %1840 = vmatmul.mubr.msk.bf16.gmra.mrb[12].mxu1 %vm326_vm0, %v2005_v8 }
  0x2a   : > { %447 = vmatprep.mubr.bf16.mxu0 %v2026_v2  ;;  %640 = vmatprep.mubr.bf16.mxu1 %v2026_v2 }
  0x31   : > { %1825 = vmatmul.mubr.msk.bf16.gmra.mrb[16].mxu0 %vm326_vm0, %v2006_v9  ;;  %1841 = vmatmul.mubr.msk.bf16.gmra.mrb[16].mxu1 %vm326_vm0, %v2006_v9 }
  0x32   : > { %457 = vmatprep.mubr.bf16.mxu0 %v2026_v2  ;;  %650 = vmatprep.mubr.bf16.mxu1 %v2026_v2 }
  0x39   : > { %1826 = vmatmul.mubr.msk.bf16.gmra.mrb[20].mxu0 %vm326_vm0, %v2007_v10  ;;  %1842 = vmatmul.mubr.msk.bf16.gmra.mrb[20].mxu1 %vm326_vm0, %v2007_v10 }
  0x3a   : > { %467 = vmatprep.mubr.bf16.mxu0 %v2026_v2  ;;  %660 = vmatprep.mubr.bf16.mxu1 %v2026_v2 }
  0x41   : > { %1827 = vmatmul.mubr.msk.bf16.gmra.mrb[24].mxu0 %vm326_vm0, %v2008_v11  ;;  %1843 = vmatmul.mubr.msk.bf16.gmra.mrb[24].mxu1 %vm326_vm0, %v2008_v11 }
  0x42   : > { %477 = vmatprep.mubr.bf16.mxu0 %v2026_v2  ;;  %670 = vmatprep.mubr.bf16.mxu1 %v2026_v2 }
  0x49   : > { %1828 = vmatmul.mubr.msk.bf16.gmra.mrb[28].mxu0 %vm326_vm0, %v2009_v12  ;;  %1844 = vmatmul.mubr.msk.bf16.gmra.mrb[28].mxu1 %vm326_vm0, %v2009_v12 }
  0x4a   : > { %487 = vmatprep.mubr.bf16.mxu0 %v2026_v2  ;;  %680 = vmatprep.mubr.bf16.mxu1 %v2026_v2 }
  0x51   : > { %1829 = vmatmul.mubr.msk.bf16.gmra.mrb[32].mxu0 %vm326_vm0, %v2010_v13  ;;  %1845 = vmatmul.mubr.msk.bf16.gmra.mrb[32].mxu1 %vm326_vm0, %v2010_v13 }
  0x52   : > { %497 = vmatprep.mubr.bf16.mxu0 %v2026_v2  ;;  %690 = vmatprep.mubr.bf16.mxu1 %v2026_v2 }
  0x59   : > { %1830 = vmatmul.mubr.msk.bf16.gmra.mrb[36].mxu0 %vm326_vm0, %v2011_v14  ;;  %1846 = vmatmul.mubr.msk.bf16.gmra.mrb[36].mxu1 %vm326_vm0, %v2011_v14 }
  0x5a   : > { %507 = vmatprep.mubr.bf16.mxu0 %v2026_v2  ;;  %700 = vmatprep.mubr.bf16.mxu1 %v2026_v2 }
  0x61   : > { %1831 = vmatmul.mubr.msk.bf16.gmra.mrb[40].mxu0 %vm326_vm0, %v2012_v15  ;;  %1847 = vmatmul.mubr.msk.bf16.gmra.mrb[40].mxu1 %vm326_vm0, %v2012_v15 }
  0x62   : > { %517 = vmatprep.mubr.bf16.mxu0 %v2026_v2  ;;  %710 = vmatprep.mubr.bf16.mxu1 %v2026_v2 }
  0x69   : > { %1832 = vmatmul.mubr.msk.bf16.gmra.mrb[44].mxu0 %vm326_vm0, %v2013_v16  ;;  %1848 = vmatmul.mubr.msk.bf16.gmra.mrb[44].mxu1 %vm326_vm0, %v2013_v16 }
  0x6a   : > { %527 = vmatprep.mubr.bf16.mxu0 %v2026_v2  ;;  %720 = vmatprep.mubr.bf16.mxu1 %v2026_v2 }
  0x71   : > { %1833 = vmatmul.mubr.msk.bf16.gmra.mrb[48].mxu0 %vm326_vm0, %v2014_v17  ;;  %1849 = vmatmul.mubr.msk.bf16.gmra.mrb[48].mxu1 %vm326_vm0, %v2014_v17 }
  0x72   : > { %537 = vmatprep.mubr.bf16.mxu0 %v2026_v2  ;;  %730 = vmatprep.mubr.bf16.mxu1 %v2026_v2 }
  0x79   : > { %1834 = vmatmul.mubr.msk.bf16.gmra.mrb[52].mxu0 %vm326_vm0, %v2015_v18  ;;  %1850 = vmatmul.mubr.msk.bf16.gmra.mrb[52].mxu1 %vm326_vm0, %v2015_v18 }
  0x7a   : > { %547 = vmatprep.mubr.bf16.mxu0 %v2026_v2  ;;  %740 = vmatprep.mubr.bf16.mxu1 %v2026_v2 }
  0x81   : > { %1835 = vmatmul.mubr.msk.bf16.gmra.mrb[56].mxu0 %vm326_vm0, %v2016_v19  ;;  %1851 = vmatmul.mubr.msk.bf16.gmra.mrb[56].mxu1 %vm326_vm0, %v2016_v19 }
  0x82   : > { %557 = vmatprep.mubr.bf16.mxu0 %v2026_v2  ;;  %750 = vmatprep.mubr.bf16.mxu1 %v2026_v2 }
  0x89   : > { %1836 = vmatmul.mubr.msk.bf16.gmra.mrb[60].mxu0 %vm326_vm0, %v2017_v20  ;;  %1852 = vmatmul.mubr.msk.bf16.gmra.mrb[60].mxu1 %vm326_vm0, %v2017_v20 }
  0xe4   : > { %v409_v21 = vpop.f32.mrb[0].mxu0  ;;  %v602_v22 = vpop.f32.mrb[0].mxu1 }
  0xe5   : > { %v1391_v23 = vmul.f32 %v409_v21, %v409_v21  ;;  %v1393_v24 = vmul.f32 %v602_v22, %v602_v22  ;;  %v411_v25 = vpop.f32.mrb[1].mxu0  ;;  %v604_v26 = vpop.f32.mrb[1].mxu1 }
  0xe6   : > { %v1922_v27 = vpack.c.bf16 %v411_v25, %v409_v21  ;;  %v1392_v28 = vmul.f32 %v411_v25, %v411_v25  ;;  %v1923_v29 = vpack.c.bf16 %v604_v26, %v602_v22  ;;  %v1394_v30 = vmul.f32 %v604_v26, %v604_v26  ;;  %v413_v31 = vpop.f32.mrb[2].mxu0  ;;  %v606_v32 = vpop.f32.mrb[2].mxu1 }
  0xe7   : > { %v1209_v33 = vadd.f32 %v413_v31, %v409_v21  ;;  %v1395_v34 = vmul.f32 %v413_v31, %v413_v31  ;;  %v1283_v35 = vadd.f32 %v606_v32, %v602_v22  ;;  %v1397_v36 = vmul.f32 %v606_v32, %v606_v32  ;;  %v415_v37 = vpop.f32.mrb[3].mxu0  ;;  %v608_v38 = vpop.f32.mrb[3].mxu1 }
  0xe8   : > { %1145 = vst [vmem:[%s2163_s30] sm:$0xff] %v1922_v27  ;;  %1146 = vst [vmem:[%s2163_s30 + $0x8] sm:$0xff] %v1923_v29  ;;  %v1924_v39 = vpack.c.bf16 %v415_v37, %v413_v31  ;;  %v1246_v40 = vadd.f32 %v415_v37, %v411_v25  ;;  %v1396_v41 = vmul.f32 %v415_v37, %v415_v37 }
  0xe9   : > { %v1925_v42 = vpack.c.bf16 %v608_v38, %v606_v32  ;;  %v1519_v43 = vadd.f32 %v1395_v34, %v1391_v23  ;;  %v1593_v44 = vadd.f32 %v1397_v36, %v1393_v24  ;;  %v1320_v45 = vadd.f32 %v608_v38, %v604_v26 }
  0xea   : > { %v1398_v46 = vmul.f32 %v608_v38, %v608_v38  ;;  %1147 = vst [vmem:[%s2163_s30 + $0x10] sm:$0xff] %v1924_v39  ;;  %v1556_v47 = vadd.f32 %v1396_v41, %v1392_v28 }
  0xeb   : > { %1148 = vst [vmem:[%s2163_s30 + $0x18] sm:$0xff] %v1925_v42 }
  0xec   : > { %v1630_v48 = vadd.f32 %v1398_v46, %v1394_v30  ;;  %v419_v49 = vpop.f32.mrb[4].mxu0  ;;  %v612_v50 = vpop.f32.mrb[4].mxu1 }
  0xed   : > { %v1210_v51 = vadd.f32 %v1209_v33, %v419_v49  ;;  %v1399_v52 = vmul.f32 %v419_v49, %v419_v49  ;;  %v1284_v53 = vadd.f32 %v1283_v35, %v612_v50  ;;  %v1401_v54 = vmul.f32 %v612_v50, %v612_v50  ;;  %v421_v55 = vpop.f32.mrb[5].mxu0  ;;  %v614_v56 = vpop.f32.mrb[5].mxu1 }
  0xee   : > { %v1926_v57 = vpack.c.bf16 %v421_v55, %v419_v49  ;;  %v1247_v58 = vadd.f32 %v1246_v40, %v421_v55  ;;  %v1400_v59 = vmul.f32 %v421_v55, %v421_v55  ;;  %v1927_v60 = vpack.c.bf16 %v614_v56, %v612_v50  ;;  %v423_v61 = vpop.f32.mrb[6].mxu0  ;;  %v616_v62 = vpop.f32.mrb[6].mxu1 }
  0xef   : > { %v1520_v63 = vadd.f32 %v1519_v43, %v1399_v52  ;;  %v1594_v0 = vadd.f32 %v1593_v44, %v1401_v54  ;;  %v1321_v1 = vadd.f32 %v1320_v45, %v614_v56  ;;  %v1402_v2 = vmul.f32 %v614_v56, %v614_v56  ;;  %v425_v3 = vpop.f32.mrb[7].mxu0  ;;  %v618_v4 = vpop.f32.mrb[7].mxu1 }
  0xf0   : > { %1149 = vst [vmem:[%s2163_s30 + $0x20] sm:$0xff] %v1926_v57  ;;  %v1557_v5 = vadd.f32 %v1556_v47, %v1400_v59  ;;  %1150 = vst [vmem:[%s2163_s30 + $0x28] sm:$0xff] %v1927_v60  ;;  %v1211_v6 = vadd.f32 %v1210_v51, %v423_v61  ;;  %v1403_v7 = vmul.f32 %v423_v61, %v423_v61 }
  0xf1   : > { %v1285_v8 = vadd.f32 %v1284_v53, %v616_v62  ;;  %v1631_v9 = vadd.f32 %v1630_v48, %v1402_v2  ;;  %v1405_v10 = vmul.f32 %v616_v62, %v616_v62  ;;  %v1928_v11 = vpack.c.bf16 %v425_v3, %v423_v61 }
  0xf2   : > { %v1248_v12 = vadd.f32 %v1247_v58, %v425_v3  ;;  %v1521_v13 = vadd.f32 %v1520_v63, %v1403_v7  ;;  %v1404_v14 = vmul.f32 %v425_v3, %v425_v3  ;;  %v1929_v15 = vpack.c.bf16 %v618_v4, %v616_v62 }
  0xf3   : > { %v1322_v16 = vadd.f32 %v1321_v1, %v618_v4  ;;  %v1595_v17 = vadd.f32 %v1594_v0, %v1405_v10  ;;  %1151 = vst [vmem:[%s2163_s30 + $0x30] sm:$0xff] %v1928_v11  ;;  %v1406_v18 = vmul.f32 %v618_v4, %v618_v4 }
  0xf4   : > { %v1558_v19 = vadd.f32 %v1557_v5, %v1404_v14  ;;  %1152 = vst [vmem:[%s2163_s30 + $0x38] sm:$0xff] %v1929_v15  ;;  %v429_v20 = vpop.f32.mrb[8].mxu0  ;;  %v622_v21 = vpop.f32.mrb[8].mxu1 }
  0xf5   : > { %v1632_v22 = vadd.f32 %v1631_v9, %v1406_v18  ;;  %v1212_v23 = vadd.f32 %v1211_v6, %v429_v20  ;;  %v1407_v24 = vmul.f32 %v429_v20, %v429_v20  ;;  %v1286_v25 = vadd.f32 %v1285_v8, %v622_v21  ;;  %v431_v26 = vpop.f32.mrb[9].mxu0  ;;  %v624_v27 = vpop.f32.mrb[9].mxu1 }
  0xf6   : > { %v1409_v28 = vmul.f32 %v622_v21, %v622_v21  ;;  %v1930_v29 = vpack.c.bf16 %v431_v26, %v429_v20  ;;  %v1249_v30 = vadd.f32 %v1248_v12, %v431_v26  ;;  %v1408_v31 = vmul.f32 %v431_v26, %v431_v26  ;;  %v433_v32 = vpop.f32.mrb[10].mxu0  ;;  %v626_v33 = vpop.f32.mrb[10].mxu1 }
  0xf7   : > { %v1522_v34 = vadd.f32 %v1521_v13, %v1407_v24  ;;  %v1931_v35 = vpack.c.bf16 %v624_v27, %v622_v21  ;;  %v1323_v36 = vadd.f32 %v1322_v16, %v624_v27  ;;  %v1410_v37 = vmul.f32 %v624_v27, %v624_v27  ;;  %v435_v38 = vpop.f32.mrb[11].mxu0  ;;  %v628_v39 = vpop.f32.mrb[11].mxu1 }
  0xf8   : > { %v1596_v40 = vadd.f32 %v1595_v17, %v1409_v28  ;;  %1153 = vst [vmem:[%s2163_s30 + $0x40] sm:$0xff] %v1930_v29  ;;  %v1559_v41 = vadd.f32 %v1558_v19, %v1408_v31  ;;  %v1213_v42 = vadd.f32 %v1212_v23, %v433_v32  ;;  %v1411_v43 = vmul.f32 %v433_v32, %v433_v32 }
  0xf9   : > { %1154 = vst [vmem:[%s2163_s30 + $0x48] sm:$0xff] %v1931_v35  ;;  %v1633_v44 = vadd.f32 %v1632_v22, %v1410_v37  ;;  %v1287_v45 = vadd.f32 %v1286_v25, %v626_v33  ;;  %v1413_v46 = vmul.f32 %v626_v33, %v626_v33  ;;  %v1932_v47 = vpack.c.bf16 %v435_v38, %v433_v32 }
  0xfa   : > { %v1523_v48 = vadd.f32 %v1522_v34, %v1411_v43  ;;  %v1250_v49 = vadd.f32 %v1249_v30, %v435_v38  ;;  %v1412_v50 = vmul.f32 %v435_v38, %v435_v38  ;;  %v1933_v51 = vpack.c.bf16 %v628_v39, %v626_v33 }
  0xfb   : > { %v1597_v52 = vadd.f32 %v1596_v40, %v1413_v46  ;;  %1155 = vst [vmem:[%s2163_s30 + $0x50] sm:$0xff] %v1932_v47  ;;  %v1324_v53 = vadd.f32 %v1323_v36, %v628_v39  ;;  %v1414_v54 = vmul.f32 %v628_v39, %v628_v39 }
  0xfc   : > { %v1560_v55 = vadd.f32 %v1559_v41, %v1412_v50  ;;  %1156 = vst [vmem:[%s2163_s30 + $0x58] sm:$0xff] %v1933_v51  ;;  %v439_v56 = vpop.f32.mrb[12].mxu0  ;;  %v632_v57 = vpop.f32.mrb[12].mxu1 }
  0xfd   : > { %v1634_v58 = vadd.f32 %v1633_v44, %v1414_v54  ;;  %v1214_v59 = vadd.f32 %v1213_v42, %v439_v56  ;;  %v1415_v60 = vmul.f32 %v439_v56, %v439_v56  ;;  %v1288_v61 = vadd.f32 %v1287_v45, %v632_v57  ;;  %v441_v62 = vpop.f32.mrb[13].mxu0  ;;  %v634_v63 = vpop.f32.mrb[13].mxu1 }
  0xfe   : > { %v1417_v0 = vmul.f32 %v632_v57, %v632_v57  ;;  %v1934_v1 = vpack.c.bf16 %v441_v62, %v439_v56  ;;  %v1251_v2 = vadd.f32 %v1250_v49, %v441_v62  ;;  %v1416_v3 = vmul.f32 %v441_v62, %v441_v62  ;;  %v443_v4 = vpop.f32.mrb[14].mxu0  ;;  %v636_v5 = vpop.f32.mrb[14].mxu1 }
  0xff   : > { %v1524_v6 = vadd.f32 %v1523_v48, %v1415_v60  ;;  %v1935_v7 = vpack.c.bf16 %v634_v63, %v632_v57  ;;  %v1325_v8 = vadd.f32 %v1324_v53, %v634_v63  ;;  %v1418_v9 = vmul.f32 %v634_v63, %v634_v63  ;;  %v445_v10 = vpop.f32.mrb[15].mxu0  ;;  %v638_v11 = vpop.f32.mrb[15].mxu1 }
 0x100   : > { %v1598_v12 = vadd.f32 %v1597_v52, %v1417_v0  ;;  %1157 = vst [vmem:[%s2163_s30 + $0x60] sm:$0xff] %v1934_v1  ;;  %v1561_v13 = vadd.f32 %v1560_v55, %v1416_v3  ;;  %v1215_v14 = vadd.f32 %v1214_v59, %v443_v4  ;;  %v1419_v15 = vmul.f32 %v443_v4, %v443_v4 }
 0x101   : > { %1158 = vst [vmem:[%s2163_s30 + $0x68] sm:$0xff] %v1935_v7  ;;  %v1635_v16 = vadd.f32 %v1634_v58, %v1418_v9  ;;  %v1289_v17 = vadd.f32 %v1288_v61, %v636_v5  ;;  %v1421_v18 = vmul.f32 %v636_v5, %v636_v5  ;;  %v1936_v19 = vpack.c.bf16 %v445_v10, %v443_v4 }
 0x102   : > { %v1525_v20 = vadd.f32 %v1524_v6, %v1419_v15  ;;  %v1252_v21 = vadd.f32 %v1251_v2, %v445_v10  ;;  %v1420_v22 = vmul.f32 %v445_v10, %v445_v10  ;;  %v1937_v23 = vpack.c.bf16 %v638_v11, %v636_v5 }
 0x103   : > { %v1599_v24 = vadd.f32 %v1598_v12, %v1421_v18  ;;  %1159 = vst [vmem:[%s2163_s30 + $0x70] sm:$0xff] %v1936_v19  ;;  %v1326_v25 = vadd.f32 %v1325_v8, %v638_v11  ;;  %v1422_v26 = vmul.f32 %v638_v11, %v638_v11 }
 0x104   : > { %v1562_v27 = vadd.f32 %v1561_v13, %v1420_v22  ;;  %1160 = vst [vmem:[%s2163_s30 + $0x78] sm:$0xff] %v1937_v23  ;;  %v449_v28 = vpop.f32.mrb[16].mxu0  ;;  %v642_v29 = vpop.f32.mrb[16].mxu1 }
 0x105   : > { %v1636_v30 = vadd.f32 %v1635_v16, %v1422_v26  ;;  %v1216_v31 = vadd.f32 %v1215_v14, %v449_v28  ;;  %v1423_v32 = vmul.f32 %v449_v28, %v449_v28  ;;  %v1290_v33 = vadd.f32 %v1289_v17, %v642_v29  ;;  %v451_v34 = vpop.f32.mrb[17].mxu0  ;;  %v644_v35 = vpop.f32.mrb[17].mxu1 }
 0x106   : > { %v1425_v36 = vmul.f32 %v642_v29, %v642_v29  ;;  %v1938_v37 = vpack.c.bf16 %v451_v34, %v449_v28  ;;  %v1253_v38 = vadd.f32 %v1252_v21, %v451_v34  ;;  %v1424_v39 = vmul.f32 %v451_v34, %v451_v34  ;;  %v453_v40 = vpop.f32.mrb[18].mxu0  ;;  %v646_v41 = vpop.f32.mrb[18].mxu1 }
 0x107   : > { %v1526_v42 = vadd.f32 %v1525_v20, %v1423_v32  ;;  %v1939_v43 = vpack.c.bf16 %v644_v35, %v642_v29  ;;  %v1327_v44 = vadd.f32 %v1326_v25, %v644_v35  ;;  %v1426_v45 = vmul.f32 %v644_v35, %v644_v35  ;;  %v455_v46 = vpop.f32.mrb[19].mxu0  ;;  %v648_v47 = vpop.f32.mrb[19].mxu1 }
 0x108   : > { %v1600_v48 = vadd.f32 %v1599_v24, %v1425_v36  ;;  %1161 = vst [vmem:[%s2163_s30 + $0x80] sm:$0xff] %v1938_v37  ;;  %v1563_v49 = vadd.f32 %v1562_v27, %v1424_v39  ;;  %v1217_v50 = vadd.f32 %v1216_v31, %v453_v40  ;;  %v1427_v51 = vmul.f32 %v453_v40, %v453_v40 }
 0x109   : > { %1162 = vst [vmem:[%s2163_s30 + $0x88] sm:$0xff] %v1939_v43  ;;  %v1637_v52 = vadd.f32 %v1636_v30, %v1426_v45  ;;  %v1291_v53 = vadd.f32 %v1290_v33, %v646_v41  ;;  %v1429_v54 = vmul.f32 %v646_v41, %v646_v41  ;;  %v1940_v55 = vpack.c.bf16 %v455_v46, %v453_v40 }
 0x10a   : > { %v1527_v56 = vadd.f32 %v1526_v42, %v1427_v51  ;;  %v1254_v57 = vadd.f32 %v1253_v38, %v455_v46  ;;  %v1428_v58 = vmul.f32 %v455_v46, %v455_v46  ;;  %v1941_v59 = vpack.c.bf16 %v648_v47, %v646_v41 }
 0x10b   : > { %v1601_v60 = vadd.f32 %v1600_v48, %v1429_v54  ;;  %1163 = vst [vmem:[%s2163_s30 + $0x90] sm:$0xff] %v1940_v55  ;;  %v1328_v61 = vadd.f32 %v1327_v44, %v648_v47  ;;  %v1430_v62 = vmul.f32 %v648_v47, %v648_v47 }
 0x10c   : > { %v1564_v63 = vadd.f32 %v1563_v49, %v1428_v58  ;;  %1164 = vst [vmem:[%s2163_s30 + $0x98] sm:$0xff] %v1941_v59  ;;  %v459_v0 = vpop.f32.mrb[20].mxu0  ;;  %v652_v1 = vpop.f32.mrb[20].mxu1 }
 0x10d   : > { %v1638_v2 = vadd.f32 %v1637_v52, %v1430_v62  ;;  %v1218_v3 = vadd.f32 %v1217_v50, %v459_v0  ;;  %v1431_v4 = vmul.f32 %v459_v0, %v459_v0  ;;  %v1292_v5 = vadd.f32 %v1291_v53, %v652_v1  ;;  %v461_v6 = vpop.f32.mrb[21].mxu0  ;;  %v654_v7 = vpop.f32.mrb[21].mxu1 }
 0x10e   : > { %v1433_v8 = vmul.f32 %v652_v1, %v652_v1  ;;  %v1942_v9 = vpack.c.bf16 %v461_v6, %v459_v0  ;;  %v1255_v10 = vadd.f32 %v1254_v57, %v461_v6  ;;  %v1432_v11 = vmul.f32 %v461_v6, %v461_v6  ;;  %v463_v12 = vpop.f32.mrb[22].mxu0  ;;  %v656_v13 = vpop.f32.mrb[22].mxu1 }
 0x10f   : > { %v1528_v14 = vadd.f32 %v1527_v56, %v1431_v4  ;;  %v1943_v15 = vpack.c.bf16 %v654_v7, %v652_v1  ;;  %v1329_v16 = vadd.f32 %v1328_v61, %v654_v7  ;;  %v1434_v17 = vmul.f32 %v654_v7, %v654_v7  ;;  %v465_v18 = vpop.f32.mrb[23].mxu0  ;;  %v658_v19 = vpop.f32.mrb[23].mxu1 }
 0x110   : > { %v1602_v20 = vadd.f32 %v1601_v60, %v1433_v8  ;;  %1165 = vst [vmem:[%s2163_s30 + $0xa0] sm:$0xff] %v1942_v9  ;;  %v1565_v21 = vadd.f32 %v1564_v63, %v1432_v11  ;;  %v1219_v22 = vadd.f32 %v1218_v3, %v463_v12  ;;  %v1435_v23 = vmul.f32 %v463_v12, %v463_v12 }
 0x111   : > { %1166 = vst [vmem:[%s2163_s30 + $0xa8] sm:$0xff] %v1943_v15  ;;  %v1639_v24 = vadd.f32 %v1638_v2, %v1434_v17  ;;  %v1293_v25 = vadd.f32 %v1292_v5, %v656_v13  ;;  %v1437_v26 = vmul.f32 %v656_v13, %v656_v13  ;;  %v1944_v27 = vpack.c.bf16 %v465_v18, %v463_v12 }
 0x112   : > { %v1529_v28 = vadd.f32 %v1528_v14, %v1435_v23  ;;  %v1256_v29 = vadd.f32 %v1255_v10, %v465_v18  ;;  %v1436_v30 = vmul.f32 %v465_v18, %v465_v18  ;;  %v1945_v31 = vpack.c.bf16 %v658_v19, %v656_v13 }
 0x113   : > { %v1603_v32 = vadd.f32 %v1602_v20, %v1437_v26  ;;  %1167 = vst [vmem:[%s2163_s30 + $0xb0] sm:$0xff] %v1944_v27  ;;  %v1330_v33 = vadd.f32 %v1329_v16, %v658_v19  ;;  %v1438_v34 = vmul.f32 %v658_v19, %v658_v19 }
 0x114   : > { %v1566_v35 = vadd.f32 %v1565_v21, %v1436_v30  ;;  %1168 = vst [vmem:[%s2163_s30 + $0xb8] sm:$0xff] %v1945_v31  ;;  %v469_v36 = vpop.f32.mrb[24].mxu0  ;;  %v662_v37 = vpop.f32.mrb[24].mxu1 }
 0x115   : > { %v1640_v38 = vadd.f32 %v1639_v24, %v1438_v34  ;;  %v1220_v39 = vadd.f32 %v1219_v22, %v469_v36  ;;  %v1439_v40 = vmul.f32 %v469_v36, %v469_v36  ;;  %v1294_v41 = vadd.f32 %v1293_v25, %v662_v37  ;;  %v471_v42 = vpop.f32.mrb[25].mxu0  ;;  %v664_v43 = vpop.f32.mrb[25].mxu1 }
 0x116   : > { %v1441_v44 = vmul.f32 %v662_v37, %v662_v37  ;;  %v1946_v45 = vpack.c.bf16 %v471_v42, %v469_v36  ;;  %v1257_v46 = vadd.f32 %v1256_v29, %v471_v42  ;;  %v1440_v47 = vmul.f32 %v471_v42, %v471_v42  ;;  %v473_v48 = vpop.f32.mrb[26].mxu0  ;;  %v666_v49 = vpop.f32.mrb[26].mxu1 }
 0x117   : > { %v1530_v50 = vadd.f32 %v1529_v28, %v1439_v40  ;;  %v1947_v51 = vpack.c.bf16 %v664_v43, %v662_v37  ;;  %v1331_v52 = vadd.f32 %v1330_v33, %v664_v43  ;;  %v1442_v53 = vmul.f32 %v664_v43, %v664_v43  ;;  %v475_v54 = vpop.f32.mrb[27].mxu0  ;;  %v668_v55 = vpop.f32.mrb[27].mxu1 }
 0x118   : > { %v1604_v56 = vadd.f32 %v1603_v32, %v1441_v44  ;;  %1169 = vst [vmem:[%s2163_s30 + $0xc0] sm:$0xff] %v1946_v45  ;;  %v1567_v57 = vadd.f32 %v1566_v35, %v1440_v47  ;;  %v1221_v58 = vadd.f32 %v1220_v39, %v473_v48  ;;  %v1443_v59 = vmul.f32 %v473_v48, %v473_v48 }
 0x119   : > { %1170 = vst [vmem:[%s2163_s30 + $0xc8] sm:$0xff] %v1947_v51  ;;  %v1641_v60 = vadd.f32 %v1640_v38, %v1442_v53  ;;  %v1295_v61 = vadd.f32 %v1294_v41, %v666_v49  ;;  %v1445_v62 = vmul.f32 %v666_v49, %v666_v49  ;;  %v1948_v63 = vpack.c.bf16 %v475_v54, %v473_v48 }
 0x11a   : > { %v1531_v0 = vadd.f32 %v1530_v50, %v1443_v59  ;;  %v1258_v1 = vadd.f32 %v1257_v46, %v475_v54  ;;  %v1444_v2 = vmul.f32 %v475_v54, %v475_v54  ;;  %v1949_v3 = vpack.c.bf16 %v668_v55, %v666_v49 }
 0x11b   : > { %v1605_v4 = vadd.f32 %v1604_v56, %v1445_v62  ;;  %1171 = vst [vmem:[%s2163_s30 + $0xd0] sm:$0xff] %v1948_v63  ;;  %v1332_v5 = vadd.f32 %v1331_v52, %v668_v55  ;;  %v1446_v6 = vmul.f32 %v668_v55, %v668_v55 }
 0x11c   : > { %v1568_v7 = vadd.f32 %v1567_v57, %v1444_v2  ;;  %1172 = vst [vmem:[%s2163_s30 + $0xd8] sm:$0xff] %v1949_v3  ;;  %v479_v8 = vpop.f32.mrb[28].mxu0  ;;  %v672_v9 = vpop.f32.mrb[28].mxu1 }
 0x11d   : > { %v1642_v10 = vadd.f32 %v1641_v60, %v1446_v6  ;;  %v1222_v11 = vadd.f32 %v1221_v58, %v479_v8  ;;  %v1447_v12 = vmul.f32 %v479_v8, %v479_v8  ;;  %v1296_v13 = vadd.f32 %v1295_v61, %v672_v9  ;;  %v481_v14 = vpop.f32.mrb[29].mxu0  ;;  %v674_v15 = vpop.f32.mrb[29].mxu1 }
 0x11e   : > { %v1449_v16 = vmul.f32 %v672_v9, %v672_v9  ;;  %v1950_v17 = vpack.c.bf16 %v481_v14, %v479_v8  ;;  %v1259_v18 = vadd.f32 %v1258_v1, %v481_v14  ;;  %v1448_v19 = vmul.f32 %v481_v14, %v481_v14  ;;  %v483_v20 = vpop.f32.mrb[30].mxu0  ;;  %v676_v21 = vpop.f32.mrb[30].mxu1 }
 0x11f   : > { %v1532_v22 = vadd.f32 %v1531_v0, %v1447_v12  ;;  %v1951_v23 = vpack.c.bf16 %v674_v15, %v672_v9  ;;  %v1333_v24 = vadd.f32 %v1332_v5, %v674_v15  ;;  %v1450_v25 = vmul.f32 %v674_v15, %v674_v15  ;;  %v485_v26 = vpop.f32.mrb[31].mxu0  ;;  %v678_v27 = vpop.f32.mrb[31].mxu1 }
 0x120   : > { %v1606_v28 = vadd.f32 %v1605_v4, %v1449_v16  ;;  %1173 = vst [vmem:[%s2163_s30 + $0xe0] sm:$0xff] %v1950_v17  ;;  %v1569_v29 = vadd.f32 %v1568_v7, %v1448_v19  ;;  %v1223_v30 = vadd.f32 %v1222_v11, %v483_v20  ;;  %v1451_v31 = vmul.f32 %v483_v20, %v483_v20 }
 0x121   : > { %1174 = vst [vmem:[%s2163_s30 + $0xe8] sm:$0xff] %v1951_v23  ;;  %v1643_v32 = vadd.f32 %v1642_v10, %v1450_v25  ;;  %v1297_v33 = vadd.f32 %v1296_v13, %v676_v21  ;;  %v1453_v34 = vmul.f32 %v676_v21, %v676_v21  ;;  %v1952_v35 = vpack.c.bf16 %v485_v26, %v483_v20 }
 0x122   : > { %v1533_v36 = vadd.f32 %v1532_v22, %v1451_v31  ;;  %v1260_v37 = vadd.f32 %v1259_v18, %v485_v26  ;;  %v1452_v38 = vmul.f32 %v485_v26, %v485_v26  ;;  %v1953_v39 = vpack.c.bf16 %v678_v27, %v676_v21 }
 0x123   : > { %v1607_v40 = vadd.f32 %v1606_v28, %v1453_v34  ;;  %1175 = vst [vmem:[%s2163_s30 + $0xf0] sm:$0xff] %v1952_v35  ;;  %v1334_v41 = vadd.f32 %v1333_v24, %v678_v27  ;;  %v1454_v42 = vmul.f32 %v678_v27, %v678_v27 }
 0x124   : > { %v1570_v43 = vadd.f32 %v1569_v29, %v1452_v38  ;;  %1176 = vst [vmem:[%s2163_s30 + $0xf8] sm:$0xff] %v1953_v39  ;;  %v489_v44 = vpop.f32.mrb[32].mxu0  ;;  %v682_v45 = vpop.f32.mrb[32].mxu1 }
 0x125   : > { %v1644_v46 = vadd.f32 %v1643_v32, %v1454_v42  ;;  %v1224_v47 = vadd.f32 %v1223_v30, %v489_v44  ;;  %v1455_v48 = vmul.f32 %v489_v44, %v489_v44  ;;  %v1298_v49 = vadd.f32 %v1297_v33, %v682_v45  ;;  %v491_v50 = vpop.f32.mrb[33].mxu0  ;;  %v684_v51 = vpop.f32.mrb[33].mxu1 }
 0x126   : > { %v1457_v52 = vmul.f32 %v682_v45, %v682_v45  ;;  %v1954_v53 = vpack.c.bf16 %v491_v50, %v489_v44  ;;  %v1261_v54 = vadd.f32 %v1260_v37, %v491_v50  ;;  %v1456_v55 = vmul.f32 %v491_v50, %v491_v50  ;;  %v493_v56 = vpop.f32.mrb[34].mxu0  ;;  %v686_v57 = vpop.f32.mrb[34].mxu1 }
 0x127   : > { %v1534_v58 = vadd.f32 %v1533_v36, %v1455_v48  ;;  %v1955_v59 = vpack.c.bf16 %v684_v51, %v682_v45  ;;  %v1335_v60 = vadd.f32 %v1334_v41, %v684_v51  ;;  %v1458_v61 = vmul.f32 %v684_v51, %v684_v51  ;;  %v495_v62 = vpop.f32.mrb[35].mxu0  ;;  %v688_v63 = vpop.f32.mrb[35].mxu1 }
 0x128   : > { %v1608_v0 = vadd.f32 %v1607_v40, %v1457_v52  ;;  %1177 = vst [vmem:[%s2163_s30 + $0x100] sm:$0xff] %v1954_v53  ;;  %v1571_v1 = vadd.f32 %v1570_v43, %v1456_v55  ;;  %v1225_v2 = vadd.f32 %v1224_v47, %v493_v56  ;;  %v1459_v3 = vmul.f32 %v493_v56, %v493_v56 }
 0x129   : > { %1178 = vst [vmem:[%s2163_s30 + $0x108] sm:$0xff] %v1955_v59  ;;  %v1645_v4 = vadd.f32 %v1644_v46, %v1458_v61  ;;  %v1299_v5 = vadd.f32 %v1298_v49, %v686_v57  ;;  %v1461_v6 = vmul.f32 %v686_v57, %v686_v57  ;;  %v1956_v7 = vpack.c.bf16 %v495_v62, %v493_v56 }
 0x12a   : > { %v1535_v8 = vadd.f32 %v1534_v58, %v1459_v3  ;;  %v1262_v9 = vadd.f32 %v1261_v54, %v495_v62  ;;  %v1460_v10 = vmul.f32 %v495_v62, %v495_v62  ;;  %v1957_v11 = vpack.c.bf16 %v688_v63, %v686_v57 }
 0x12b   : > { %v1609_v12 = vadd.f32 %v1608_v0, %v1461_v6  ;;  %1179 = vst [vmem:[%s2163_s30 + $0x110] sm:$0xff] %v1956_v7  ;;  %v1336_v13 = vadd.f32 %v1335_v60, %v688_v63  ;;  %v1462_v14 = vmul.f32 %v688_v63, %v688_v63 }
 0x12c   : > { %v1572_v15 = vadd.f32 %v1571_v1, %v1460_v10  ;;  %1180 = vst [vmem:[%s2163_s30 + $0x118] sm:$0xff] %v1957_v11  ;;  %v499_v16 = vpop.f32.mrb[36].mxu0  ;;  %v692_v17 = vpop.f32.mrb[36].mxu1 }
 0x12d   : > { %v1646_v18 = vadd.f32 %v1645_v4, %v1462_v14  ;;  %v1226_v19 = vadd.f32 %v1225_v2, %v499_v16  ;;  %v1463_v20 = vmul.f32 %v499_v16, %v499_v16  ;;  %v1300_v21 = vadd.f32 %v1299_v5, %v692_v17  ;;  %v501_v22 = vpop.f32.mrb[37].mxu0  ;;  %v694_v23 = vpop.f32.mrb[37].mxu1 }
 0x12e   : > { %v1465_v24 = vmul.f32 %v692_v17, %v692_v17  ;;  %v1958_v25 = vpack.c.bf16 %v501_v22, %v499_v16  ;;  %v1263_v26 = vadd.f32 %v1262_v9, %v501_v22  ;;  %v1464_v27 = vmul.f32 %v501_v22, %v501_v22  ;;  %v503_v28 = vpop.f32.mrb[38].mxu0  ;;  %v696_v29 = vpop.f32.mrb[38].mxu1 }
 0x12f   : > { %v1536_v30 = vadd.f32 %v1535_v8, %v1463_v20  ;;  %v1959_v31 = vpack.c.bf16 %v694_v23, %v692_v17  ;;  %v1337_v32 = vadd.f32 %v1336_v13, %v694_v23  ;;  %v1466_v33 = vmul.f32 %v694_v23, %v694_v23  ;;  %v505_v34 = vpop.f32.mrb[39].mxu0  ;;  %v698_v35 = vpop.f32.mrb[39].mxu1 }
 0x130   : > { %v1610_v36 = vadd.f32 %v1609_v12, %v1465_v24  ;;  %1181 = vst [vmem:[%s2163_s30 + $0x120] sm:$0xff] %v1958_v25  ;;  %v1573_v37 = vadd.f32 %v1572_v15, %v1464_v27  ;;  %v1227_v38 = vadd.f32 %v1226_v19, %v503_v28  ;;  %v1467_v39 = vmul.f32 %v503_v28, %v503_v28 }
 0x131   : > { %1182 = vst [vmem:[%s2163_s30 + $0x128] sm:$0xff] %v1959_v31  ;;  %v1647_v40 = vadd.f32 %v1646_v18, %v1466_v33  ;;  %v1301_v41 = vadd.f32 %v1300_v21, %v696_v29  ;;  %v1469_v42 = vmul.f32 %v696_v29, %v696_v29  ;;  %v1960_v43 = vpack.c.bf16 %v505_v34, %v503_v28 }
 0x132   : > { %v1537_v44 = vadd.f32 %v1536_v30, %v1467_v39  ;;  %v1264_v45 = vadd.f32 %v1263_v26, %v505_v34  ;;  %v1468_v46 = vmul.f32 %v505_v34, %v505_v34  ;;  %v1961_v47 = vpack.c.bf16 %v698_v35, %v696_v29 }
 0x133   : > { %v1611_v48 = vadd.f32 %v1610_v36, %v1469_v42  ;;  %1183 = vst [vmem:[%s2163_s30 + $0x130] sm:$0xff] %v1960_v43  ;;  %v1338_v49 = vadd.f32 %v1337_v32, %v698_v35  ;;  %v1470_v50 = vmul.f32 %v698_v35, %v698_v35 }
 0x134   : > { %v1574_v51 = vadd.f32 %v1573_v37, %v1468_v46  ;;  %1184 = vst [vmem:[%s2163_s30 + $0x138] sm:$0xff] %v1961_v47  ;;  %v509_v52 = vpop.f32.mrb[40].mxu0  ;;  %v702_v53 = vpop.f32.mrb[40].mxu1 }
 0x135   : > { %v1648_v54 = vadd.f32 %v1647_v40, %v1470_v50  ;;  %v1228_v55 = vadd.f32 %v1227_v38, %v509_v52  ;;  %v1471_v56 = vmul.f32 %v509_v52, %v509_v52  ;;  %v1302_v57 = vadd.f32 %v1301_v41, %v702_v53  ;;  %v511_v58 = vpop.f32.mrb[41].mxu0  ;;  %v704_v59 = vpop.f32.mrb[41].mxu1 }
 0x136   : > { %v1473_v60 = vmul.f32 %v702_v53, %v702_v53  ;;  %v1962_v61 = vpack.c.bf16 %v511_v58, %v509_v52  ;;  %v1265_v62 = vadd.f32 %v1264_v45, %v511_v58  ;;  %v1472_v63 = vmul.f32 %v511_v58, %v511_v58  ;;  %v513_v0 = vpop.f32.mrb[42].mxu0  ;;  %v706_v1 = vpop.f32.mrb[42].mxu1 }
 0x137   : > { %v1538_v2 = vadd.f32 %v1537_v44, %v1471_v56  ;;  %v1963_v3 = vpack.c.bf16 %v704_v59, %v702_v53  ;;  %v1339_v4 = vadd.f32 %v1338_v49, %v704_v59  ;;  %v1474_v5 = vmul.f32 %v704_v59, %v704_v59  ;;  %v515_v6 = vpop.f32.mrb[43].mxu0  ;;  %v708_v7 = vpop.f32.mrb[43].mxu1 }
 0x138   : > { %v1612_v8 = vadd.f32 %v1611_v48, %v1473_v60  ;;  %1185 = vst [vmem:[%s2163_s30 + $0x140] sm:$0xff] %v1962_v61  ;;  %v1575_v9 = vadd.f32 %v1574_v51, %v1472_v63  ;;  %v1229_v10 = vadd.f32 %v1228_v55, %v513_v0  ;;  %v1475_v11 = vmul.f32 %v513_v0, %v513_v0 }
 0x139   : > { %1186 = vst [vmem:[%s2163_s30 + $0x148] sm:$0xff] %v1963_v3  ;;  %v1649_v12 = vadd.f32 %v1648_v54, %v1474_v5  ;;  %v1303_v13 = vadd.f32 %v1302_v57, %v706_v1  ;;  %v1477_v14 = vmul.f32 %v706_v1, %v706_v1  ;;  %v1964_v15 = vpack.c.bf16 %v515_v6, %v513_v0 }
 0x13a   : > { %v1539_v16 = vadd.f32 %v1538_v2, %v1475_v11  ;;  %v1266_v17 = vadd.f32 %v1265_v62, %v515_v6  ;;  %v1476_v18 = vmul.f32 %v515_v6, %v515_v6  ;;  %v1965_v19 = vpack.c.bf16 %v708_v7, %v706_v1 }
 0x13b   : > { %v1613_v20 = vadd.f32 %v1612_v8, %v1477_v14  ;;  %1187 = vst [vmem:[%s2163_s30 + $0x150] sm:$0xff] %v1964_v15  ;;  %v1340_v21 = vadd.f32 %v1339_v4, %v708_v7  ;;  %v1478_v22 = vmul.f32 %v708_v7, %v708_v7 }
 0x13c   : > { %v1576_v23 = vadd.f32 %v1575_v9, %v1476_v18  ;;  %1188 = vst [vmem:[%s2163_s30 + $0x158] sm:$0xff] %v1965_v19  ;;  %v519_v24 = vpop.f32.mrb[44].mxu0  ;;  %v712_v25 = vpop.f32.mrb[44].mxu1 }
 0x13d   : > { %v1650_v26 = vadd.f32 %v1649_v12, %v1478_v22  ;;  %v1230_v27 = vadd.f32 %v1229_v10, %v519_v24  ;;  %v1479_v28 = vmul.f32 %v519_v24, %v519_v24  ;;  %v1304_v29 = vadd.f32 %v1303_v13, %v712_v25  ;;  %v521_v30 = vpop.f32.mrb[45].mxu0  ;;  %v714_v31 = vpop.f32.mrb[45].mxu1 }
 0x13e   : > { %v1481_v32 = vmul.f32 %v712_v25, %v712_v25  ;;  %v1966_v33 = vpack.c.bf16 %v521_v30, %v519_v24  ;;  %v1267_v34 = vadd.f32 %v1266_v17, %v521_v30  ;;  %v1480_v35 = vmul.f32 %v521_v30, %v521_v30  ;;  %v523_v36 = vpop.f32.mrb[46].mxu0  ;;  %v716_v37 = vpop.f32.mrb[46].mxu1 }
 0x13f   : > { %v1540_v38 = vadd.f32 %v1539_v16, %v1479_v28  ;;  %v1967_v39 = vpack.c.bf16 %v714_v31, %v712_v25  ;;  %v1341_v40 = vadd.f32 %v1340_v21, %v714_v31  ;;  %v1482_v41 = vmul.f32 %v714_v31, %v714_v31  ;;  %v525_v42 = vpop.f32.mrb[47].mxu0  ;;  %v718_v43 = vpop.f32.mrb[47].mxu1 }
 0x140   : > { %v1614_v44 = vadd.f32 %v1613_v20, %v1481_v32  ;;  %1189 = vst [vmem:[%s2163_s30 + $0x160] sm:$0xff] %v1966_v33  ;;  %v1577_v45 = vadd.f32 %v1576_v23, %v1480_v35  ;;  %v1231_v46 = vadd.f32 %v1230_v27, %v523_v36  ;;  %v1483_v47 = vmul.f32 %v523_v36, %v523_v36 }
 0x141   : > { %1190 = vst [vmem:[%s2163_s30 + $0x168] sm:$0xff] %v1967_v39  ;;  %v1651_v48 = vadd.f32 %v1650_v26, %v1482_v41  ;;  %v1305_v49 = vadd.f32 %v1304_v29, %v716_v37  ;;  %v1485_v50 = vmul.f32 %v716_v37, %v716_v37  ;;  %v1968_v51 = vpack.c.bf16 %v525_v42, %v523_v36 }
 0x142   : > { %v1541_v52 = vadd.f32 %v1540_v38, %v1483_v47  ;;  %v1268_v53 = vadd.f32 %v1267_v34, %v525_v42  ;;  %v1484_v54 = vmul.f32 %v525_v42, %v525_v42  ;;  %v1969_v55 = vpack.c.bf16 %v718_v43, %v716_v37 }
 0x143   : > { %v1615_v56 = vadd.f32 %v1614_v44, %v1485_v50  ;;  %1191 = vst [vmem:[%s2163_s30 + $0x170] sm:$0xff] %v1968_v51  ;;  %v1342_v57 = vadd.f32 %v1341_v40, %v718_v43  ;;  %v1486_v58 = vmul.f32 %v718_v43, %v718_v43 }
 0x144   : > { %v1578_v59 = vadd.f32 %v1577_v45, %v1484_v54  ;;  %1192 = vst [vmem:[%s2163_s30 + $0x178] sm:$0xff] %v1969_v55  ;;  %v529_v60 = vpop.f32.mrb[48].mxu0  ;;  %v722_v61 = vpop.f32.mrb[48].mxu1 }
 0x145   : > { %v1652_v62 = vadd.f32 %v1651_v48, %v1486_v58  ;;  %v1232_v63 = vadd.f32 %v1231_v46, %v529_v60  ;;  %v1487_v0 = vmul.f32 %v529_v60, %v529_v60  ;;  %v1306_v1 = vadd.f32 %v1305_v49, %v722_v61  ;;  %v531_v2 = vpop.f32.mrb[49].mxu0  ;;  %v724_v3 = vpop.f32.mrb[49].mxu1 }
 0x146   : > { %v1489_v4 = vmul.f32 %v722_v61, %v722_v61  ;;  %v1970_v5 = vpack.c.bf16 %v531_v2, %v529_v60  ;;  %v1269_v6 = vadd.f32 %v1268_v53, %v531_v2  ;;  %v1488_v7 = vmul.f32 %v531_v2, %v531_v2  ;;  %v533_v8 = vpop.f32.mrb[50].mxu0  ;;  %v726_v9 = vpop.f32.mrb[50].mxu1 }
 0x147   : > { %v1542_v10 = vadd.f32 %v1541_v52, %v1487_v0  ;;  %v1971_v11 = vpack.c.bf16 %v724_v3, %v722_v61  ;;  %v1343_v12 = vadd.f32 %v1342_v57, %v724_v3  ;;  %v1490_v13 = vmul.f32 %v724_v3, %v724_v3  ;;  %v535_v14 = vpop.f32.mrb[51].mxu0  ;;  %v728_v15 = vpop.f32.mrb[51].mxu1 }
 0x148   : > { %v1616_v16 = vadd.f32 %v1615_v56, %v1489_v4  ;;  %1193 = vst [vmem:[%s2163_s30 + $0x180] sm:$0xff] %v1970_v5  ;;  %v1579_v17 = vadd.f32 %v1578_v59, %v1488_v7  ;;  %v1233_v18 = vadd.f32 %v1232_v63, %v533_v8  ;;  %v1491_v19 = vmul.f32 %v533_v8, %v533_v8 }
 0x149   : > { %1194 = vst [vmem:[%s2163_s30 + $0x188] sm:$0xff] %v1971_v11  ;;  %v1653_v20 = vadd.f32 %v1652_v62, %v1490_v13  ;;  %v1307_v21 = vadd.f32 %v1306_v1, %v726_v9  ;;  %v1493_v22 = vmul.f32 %v726_v9, %v726_v9  ;;  %v1972_v23 = vpack.c.bf16 %v535_v14, %v533_v8 }
 0x14a   : > { %v1543_v24 = vadd.f32 %v1542_v10, %v1491_v19  ;;  %v1270_v25 = vadd.f32 %v1269_v6, %v535_v14  ;;  %v1492_v26 = vmul.f32 %v535_v14, %v535_v14  ;;  %v1973_v27 = vpack.c.bf16 %v728_v15, %v726_v9 }
 0x14b   : > { %v1617_v28 = vadd.f32 %v1616_v16, %v1493_v22  ;;  %1195 = vst [vmem:[%s2163_s30 + $0x190] sm:$0xff] %v1972_v23  ;;  %v1344_v29 = vadd.f32 %v1343_v12, %v728_v15  ;;  %v1494_v30 = vmul.f32 %v728_v15, %v728_v15  ;;  %v2027_v6 = vmov 1966171168  }
 0x14c   : > { %v1580_v31 = vadd.f32 %v1579_v17, %v1492_v26  ;;  %1196 = vst [vmem:[%s2163_s30 + $0x198] sm:$0xff] %v1973_v27  ;;  %v539_v32 = vpop.f32.mrb[52].mxu0  ;;  %v732_v33 = vpop.f32.mrb[52].mxu1  ;;  %v2221_v7 = vunpack.c.l.s4 %v2027_v6  ;;  %v1366_v8 = vlaneseq }
 0x14d   : > { %v1654_v34 = vadd.f32 %v1653_v20, %v1494_v30  ;;  %v1234_v35 = vadd.f32 %v1233_v18, %v539_v32  ;;  %v1495_v36 = vmul.f32 %v539_v32, %v539_v32  ;;  %v1308_v37 = vadd.f32 %v1307_v21, %v732_v33  ;;  %v541_v38 = vpop.f32.mrb[53].mxu0  ;;  %v734_v39 = vpop.f32.mrb[53].mxu1 }
 0x14e   : > { %v1497_v40 = vmul.f32 %v732_v33, %v732_v33  ;;  %v1974_v41 = vpack.c.bf16 %v541_v38, %v539_v32  ;;  %v1271_v42 = vadd.f32 %v1270_v25, %v541_v38  ;;  %v1496_v43 = vmul.f32 %v541_v38, %v541_v38  ;;  %v543_v44 = vpop.f32.mrb[54].mxu0  ;;  %v736_v45 = vpop.f32.mrb[54].mxu1 }
 0x14f   : > { %v1544_v46 = vadd.f32 %v1543_v24, %v1495_v36  ;;  %v1975_v47 = vpack.c.bf16 %v734_v39, %v732_v33  ;;  %v1345_v48 = vadd.f32 %v1344_v29, %v734_v39  ;;  %v1498_v49 = vmul.f32 %v734_v39, %v734_v39  ;;  %v545_v50 = vpop.f32.mrb[55].mxu0  ;;  %v738_v51 = vpop.f32.mrb[55].mxu1 }
 0x150   : > { %v1618_v52 = vadd.f32 %v1617_v28, %v1497_v40  ;;  %1197 = vst [vmem:[%s2163_s30 + $0x1a0] sm:$0xff] %v1974_v41  ;;  %v1581_v53 = vadd.f32 %v1580_v31, %v1496_v43  ;;  %v1235_v54 = vadd.f32 %v1234_v35, %v543_v44  ;;  %v1499_v55 = vmul.f32 %v543_v44, %v543_v44 }
 0x151   : > { %1198 = vst [vmem:[%s2163_s30 + $0x1a8] sm:$0xff] %v1975_v47  ;;  %v1655_v56 = vadd.f32 %v1654_v34, %v1498_v49  ;;  %v1309_v57 = vadd.f32 %v1308_v37, %v736_v45  ;;  %v1501_v58 = vmul.f32 %v736_v45, %v736_v45  ;;  %v1976_v59 = vpack.c.bf16 %v545_v50, %v543_v44 }
 0x152   : > { %v1545_v60 = vadd.f32 %v1544_v46, %v1499_v55  ;;  %v1272_v61 = vadd.f32 %v1271_v42, %v545_v50  ;;  %v1500_v62 = vmul.f32 %v545_v50, %v545_v50  ;;  %v1977_v63 = vpack.c.bf16 %v738_v51, %v736_v45 }
 0x153   : > { %v1619_v0 = vadd.f32 %v1618_v52, %v1501_v58  ;;  %1199 = vst [vmem:[%s2163_s30 + $0x1b0] sm:$0xff] %v1976_v59  ;;  %v1346_v1 = vadd.f32 %v1345_v48, %v738_v51  ;;  %v1502_v2 = vmul.f32 %v738_v51, %v738_v51  ;;  %v1365_v45 = vunpack.c.0.s8 %v2221_v7 }
 0x154   : > { %v1582_v3 = vadd.f32 %v1581_v53, %v1500_v62  ;;  %1200 = vst [vmem:[%s2163_s30 + $0x1b8] sm:$0xff] %v1977_v63  ;;  %v549_v4 = vpop.f32.mrb[56].mxu0  ;;  %v742_v5 = vpop.f32.mrb[56].mxu1  ;;  %v2229_v46 = vshrl.u32 %v1366_v8, 7  ;;  %vm1388_vm1 = vcmp.lt.s32.totalorder %v1366_v8, 512 }
 0x155   : > { %v1656_v9 = vadd.f32 %v1655_v56, %v1502_v2  ;;  %v1236_v10 = vadd.f32 %v1235_v54, %v549_v4  ;;  %v1503_v11 = vmul.f32 %v549_v4, %v549_v4  ;;  %v1310_v12 = vadd.f32 %v1309_v57, %v742_v5  ;;  %v551_v13 = vpop.f32.mrb[57].mxu0  ;;  %v744_v14 = vpop.f32.mrb[57].mxu1 }
 0x156   : > { %v1505_v15 = vmul.f32 %v742_v5, %v742_v5  ;;  %v1978_v16 = vpack.c.bf16 %v551_v13, %v549_v4  ;;  %v1273_v17 = vadd.f32 %v1272_v61, %v551_v13  ;;  %v1504_v18 = vmul.f32 %v551_v13, %v551_v13  ;;  %v553_v19 = vpop.f32.mrb[58].mxu0  ;;  %v746_v20 = vpop.f32.mrb[58].mxu1 }
 0x157   : > { %v1546_v21 = vadd.f32 %v1545_v60, %v1503_v11  ;;  %v1979_v22 = vpack.c.bf16 %v744_v14, %v742_v5  ;;  %v1347_v23 = vadd.f32 %v1346_v1, %v744_v14  ;;  %v1506_v24 = vmul.f32 %v744_v14, %v744_v14  ;;  %v555_v25 = vpop.f32.mrb[59].mxu0  ;;  %v748_v26 = vpop.f32.mrb[59].mxu1 }
 0x158   : > { %v1620_v27 = vadd.f32 %v1619_v0, %v1505_v15  ;;  %1201 = vst [vmem:[%s2163_s30 + $0x1c0] sm:$0xff] %v1978_v16  ;;  %v1583_v28 = vadd.f32 %v1582_v3, %v1504_v18  ;;  %v1237_v29 = vadd.f32 %v1236_v10, %v553_v19  ;;  %v1507_v30 = vmul.f32 %v553_v19, %v553_v19 }
 0x159   : > { %1202 = vst [vmem:[%s2163_s30 + $0x1c8] sm:$0xff] %v1979_v22  ;;  %v1657_v31 = vadd.f32 %v1656_v9, %v1506_v24  ;;  %v1311_v32 = vadd.f32 %v1310_v12, %v746_v20  ;;  %v1509_v33 = vmul.f32 %v746_v20, %v746_v20  ;;  %v1980_v34 = vpack.c.bf16 %v555_v25, %v553_v19 }
 0x15a   : > { %v1547_v35 = vadd.f32 %v1546_v21, %v1507_v30  ;;  %v1274_v36 = vadd.f32 %v1273_v17, %v555_v25  ;;  %v1508_v37 = vmul.f32 %v555_v25, %v555_v25  ;;  %v1981_v38 = vpack.c.bf16 %v748_v26, %v746_v20 }
 0x15b   : > { %v1621_v39 = vadd.f32 %v1620_v27, %v1509_v33  ;;  %1203 = vst [vmem:[%s2163_s30 + $0x1d0] sm:$0xff] %v1980_v34  ;;  %v1348_v40 = vadd.f32 %v1347_v23, %v748_v26  ;;  %v1510_v41 = vmul.f32 %v748_v26, %v748_v26 }
 0x15c   : > { %v1584_v42 = vadd.f32 %v1583_v28, %v1508_v37  ;;  %1204 = vst [vmem:[%s2163_s30 + $0x1d8] sm:$0xff] %v1981_v38  ;;  %v559_v43 = vpop.f32.mrb[60].mxu0  ;;  %v752_v44 = vpop.f32.mrb[60].mxu1 }
 0x15d   : > { %v1658_v47 = vadd.f32 %v1657_v31, %v1510_v41  ;;  %v1238_v48 = vadd.f32 %v1237_v29, %v559_v43  ;;  %v1511_v49 = vmul.f32 %v559_v43, %v559_v43  ;;  %v1312_v50 = vadd.f32 %v1311_v32, %v752_v44  ;;  %v561_v51 = vpop.f32.mrb[61].mxu0  ;;  %v754_v52 = vpop.f32.mrb[61].mxu1 }
 0x15e   : > { %v1513_v53 = vmul.f32 %v752_v44, %v752_v44  ;;  %v1982_v54 = vpack.c.bf16 %v561_v51, %v559_v43  ;;  %v1275_v55 = vadd.f32 %v1274_v36, %v561_v51  ;;  %v1512_v56 = vmul.f32 %v561_v51, %v561_v51  ;;  %v563_v57 = vpop.f32.mrb[62].mxu0  ;;  %v756_v58 = vpop.f32.mrb[62].mxu1 }
 0x15f   : > { %v1548_v59 = vadd.f32 %v1547_v35, %v1511_v49  ;;  %v1983_v60 = vpack.c.bf16 %v754_v52, %v752_v44  ;;  %v1349_v61 = vadd.f32 %v1348_v40, %v754_v52  ;;  %v1514_v62 = vmul.f32 %v754_v52, %v754_v52  ;;  %v565_v63 = vpop.f32.mrb[63].mxu0  ;;  %v758_v0 = vpop.f32.mrb[63].mxu1 }
 0x160   : > { %v1622_v1 = vadd.f32 %v1621_v39, %v1513_v53  ;;  %1205 = vst [vmem:[%s2163_s30 + $0x1e0] sm:$0xff] %v1982_v54  ;;  %v1585_v2 = vadd.f32 %v1584_v42, %v1512_v56  ;;  %v1239_v3 = vadd.f32 %v1238_v48, %v563_v57  ;;  %v1515_v4 = vmul.f32 %v563_v57, %v563_v57 }
 0x161   : > { %1206 = vst [vmem:[%s2163_s30 + $0x1e8] sm:$0xff] %v1983_v60  ;;  %v1659_v5 = vadd.f32 %v1658_v47, %v1514_v62  ;;  %v1313_v6 = vadd.f32 %v1312_v50, %v756_v58  ;;  %v1517_v9 = vmul.f32 %v756_v58, %v756_v58  ;;  %v1984_v10 = vpack.c.bf16 %v565_v63, %v563_v57 }
 0x162   : > { %v1240_v11 = vrot.slane %v1239_v3, 4  ;;  %v1549_v12 = vadd.f32 %v1548_v59, %v1515_v4  ;;  %v1276_v13 = vadd.f32 %v1275_v55, %v565_v63  ;;  %v1516_v14 = vmul.f32 %v565_v63, %v565_v63 }
 0x163   : > { %v1314_v15 = vrot.slane %v1313_v6, 4  ;;  %v1623_v16 = vadd.f32 %v1622_v1, %v1517_v9  ;;  %1207 = vst [vmem:[%s2163_s30 + $0x1f0] sm:$0xff] %v1984_v10  ;;  %v1985_v17 = vpack.c.bf16 %v758_v0, %v756_v58  ;;  %v1350_v18 = vadd.f32 %v1349_v61, %v758_v0 }
 0x164   : > { %v1241_v19 = vadd.f32 %v1240_v11, %v1239_v3  ;;  %v1550_v20 = vrot.slane %v1549_v12, 4  ;;  %v1277_v21 = vrot.slane %v1276_v13, 4  ;;  %v1586_v22 = vadd.f32 %v1585_v2, %v1516_v14 }
 0x165   : > { %v1315_v23 = vadd.f32 %v1314_v15, %v1313_v6  ;;  %v1624_v24 = vrot.slane %v1623_v16, 4  ;;  %1208 = vst [vmem:[%s2163_s30 + $0x1f8] sm:$0xff] %v1985_v17  ;;  %v1351_v25 = vrot.slane %v1350_v18, 4  ;;  %v1518_v26 = vmul.f32 %v758_v0, %v758_v0 }
 0x166   : > { %v1242_v27 = vrot.slane %v1241_v19, 2  ;;  %v1551_v28 = vadd.f32 %v1550_v20, %v1549_v12  ;;  %v1278_v29 = vadd.f32 %v1277_v21, %v1276_v13  ;;  %v1587_v30 = vrot.slane %v1586_v22, 4 }
 0x167   : > { %v1316_v31 = vrot.slane %v1315_v23, 2  ;;  %v1625_v32 = vadd.f32 %v1624_v24, %v1623_v16  ;;  %v1352_v33 = vadd.f32 %v1351_v25, %v1350_v18  ;;  %v1660_v34 = vadd.f32 %v1659_v5, %v1518_v26 }
 0x168   : > { %v1243_v35 = vadd.f32 %v1242_v27, %v1241_v19  ;;  %v1552_v36 = vrot.slane %v1551_v28, 2  ;;  %v1279_v37 = vrot.slane %v1278_v29, 2  ;;  %v1588_v38 = vadd.f32 %v1587_v30, %v1586_v22 }
 0x169   : > { %v1317_v39 = vadd.f32 %v1316_v31, %v1315_v23  ;;  %v1626_v40 = vrot.slane %v1625_v32, 2  ;;  %v1353_v41 = vrot.slane %v1352_v33, 2  ;;  %v1661_v42 = vrot.slane %v1660_v34, 4 }
 0x16a   : > { %v1244_v43 = vrot.slane %v1243_v35, 1  ;;  %v1553_v44 = vadd.f32 %v1552_v36, %v1551_v28  ;;  %v1280_v47 = vadd.f32 %v1279_v37, %v1278_v29  ;;  %v1589_v48 = vrot.slane %v1588_v38, 2 }
 0x16b   : > { %v1318_v49 = vrot.slane %v1317_v39, 1  ;;  %v1627_v50 = vadd.f32 %v1626_v40, %v1625_v32  ;;  %v1354_v51 = vadd.f32 %v1353_v41, %v1352_v33  ;;  %v1662_v52 = vadd.f32 %v1661_v42, %v1660_v34 }
 0x16c   : > { %v1245_v53 = vadd.f32 %v1244_v43, %v1243_v35  ;;  %v1554_v54 = vrot.slane %v1553_v44, 1  ;;  %v1281_v55 = vrot.slane %v1280_v47, 1  ;;  %v1590_v56 = vadd.f32 %v1589_v48, %v1588_v38 }
 0x16d   : > { %v1319_v57 = vadd.f32 %v1318_v49, %v1317_v39  ;;  %v1628_v58 = vrot.slane %v1627_v50, 1  ;;  %v1355_v59 = vrot.slane %v1354_v51, 1  ;;  %v1663_v60 = vrot.slane %v1662_v52, 2 }
 0x16e   : > { %v1555_v61 = vadd.f32 %v1554_v54, %v1553_v44  ;;  %v1282_v62 = vadd.f32 %v1281_v55, %v1280_v47  ;;  %v1368_v63 = vsub.s32 %v1365_v45, %v2229_v46  ;;  %v1591_v0 = vrot.slane %v1590_v56, 1 }
 0x16f   : > { %v1356_v1 = vadd.f32 %v1355_v59, %v1354_v51  ;;  %v1664_v2 = vadd.f32 %v1663_v60, %v1662_v52  ;;  %v1629_v5 = vadd.f32 %v1628_v58, %v1627_v50 }
 0x170   : > { %v1361_v3 = vcombine.low %v1245_v53, %v1282_v62  ;;  %v1592_v4 = vadd.f32 %v1591_v0, %v1590_v56 }
 0x171   : > { %v1362_v6 = vcombine.low %v1319_v57, %v1356_v1  ;;  %v1665_v9 = vrot.slane %v1664_v2, 1 }
 0x172   : > { %v1369_v10 = vrot.slane %v1361_v3, %v1368_v63  ;;  %v1671_v11 = vcombine.low %v1555_v61, %v1592_v4 }
 0x173   : > { %v1376_v12 = vrot.slane %v1362_v6, %v1368_v63  ;;  %v1666_v13 = vadd.f32 %v1665_v9, %v1664_v2 }
 0x174   : > { %v1679_v14 = vrot.slane %v1671_v11, %v1368_v63 }
 0x175   : > { %v1377_v15 = vcombine.low %v1369_v10, %v1376_v12  ;;  %v1672_v16 = vcombine.low %v1629_v5, %v1666_v13 }
 0x177   : > { %v1384_v7 = vrot.slane %v1377_v15, %v1368_v63  ;;  %v1686_v45 = vrot.slane %v1672_v16, %v1368_v63 }
 0x179   : > { %1390 = vst.msk [vmem:[%s188_s7] ss:$2 sm:$0xf] %vm1388_vm1, %v1384_v7  ;;  %v1687_v46 = vcombine.low %v1679_v14, %v1686_v45 }
 0x17b   : > { %v1694_v17 = vrot.slane %v1687_v46, %v1368_v63 }
 0x17d   : > { %1917 = vst.msk [vmem:[%s188_s7 + $0x1] ss:$2 sm:$0xf] %vm1388_vm1, %v1694_v17 }
 0x17e PF: > { %s14_s12 = sadd.s32 1, %s2024_s12  }
 0x17f   : > { %p11_p5 = scmp.ge.s32.totalorder %s14_s12, 4  }
 0x181   :  { %13 = sbr.rel (!%p11_p5) target bundleno = 1 (0x1), region = 71 }

// kernel: up_forward.3
= control target key start
LH: loop header
LB: loop body
LE: loop exit
PB: predicated region body
PF: predicated region fallthrough
CT: control target
= control target key end

     0   :  { %s1484_s12 = smov 0   ;;  %s2177_s0 = inlined_call_operand.vmem [shape: bf16[512,512], index: 0, kind: input, shape index: {}, may-alias: {0,3}]   ;;  %s2178_s1 = inlined_call_operand.vmem [shape: f32[1,512], index: 1, kind: input, shape index: {}]   ;;  %s2179_s2 = inlined_call_operand.vmem [shape: f32[1,512], index: 2, kind: input, shape index: {}]   ;;  %s2180_s3 = inlined_call_operand.vmem [shape: bf16[512,512], index: 3, kind: output, shape index: {}, may-alias: {0,3}]  }
   0x1 LB: > { %s1305_s13 = sadd.s32 4294967295, %s1462_s12   ;;  %p1309_p0 = scmp.ge.s32.totalorder %s1462_s12, 1  ;;  %s1462_s12 = sphi %s1484_s12, %s13_s12  }
   0x2   : > { %p139_p1 = scmp.lt.s32.totalorder %s1462_s12, 3 }
   0x4   : > { %p140_p2 = pnand %p1309_p0, %p139_p1 }
   0x6   : > { %143 = sbr.rel (%p140_p2) target bundleno = 177 (0xb1), region = 32 }
   0xd   : > { %s1310_s14 = sshll.u32 %s1305_s13, 5  ;;  %v373_v0 = vlaneseq  ;;  %v371_v2 = vld [vmem:[%s2178_s1] sm:$0xf] }
   0xe   : > { %p166_p3 = scmp.lt.s32.totalorder %s1310_s14, 63  ;;  %v521_v3 = vld [vmem:[%s2179_s2] sm:$0xf] }
   0xf   : > { %v374_v1 = vshrl.u32 %v373_v0, 7 }
  0x10   : > { %s2237_s14 = smov (!%p166_p3, %s1310_s14), 63 }
  0x11   : > { %v375_v4 = vsub.s32 0, %v374_v1  ;;  %v379_v5 = vsub.s32 1, %v374_v1  ;;  %v383_v6 = vsub.s32 2, %v374_v1  ;;  %v387_v7 = vsub.s32 3, %v374_v1  ;;  %s1382_s19 = sshll.u32 %s2237_s14, 4 }
  0x12   : > { %s1506_s22 = scalar_lea.vmem %s2177_s0, %s1382_s19  ;;  %s1612_s25 = scalar_lea.vmem %s2180_s3, %s1382_s19 }
  0x13   : > { %v1508_v8 = vrot.slane %v371_v2, %v375_v4  ;;  %v1510_v9 = vrot.slane %v371_v2, %v379_v5  ;;  %v1512_v10 = vrot.slane %v521_v3, %v375_v4  ;;  %v1514_v11 = vrot.slane %v521_v3, %v379_v5  ;;  %v179_v12 = vld [vmem:[%s1506_s22] sm:$0xff]  ;;  %v180_v13 = vld [vmem:[%s1506_s22 + $0x8] sm:$0xff]  ;;  %v181_v14 = vld [vmem:[%s1506_s22 + $0x10] sm:$0xff] }
  0x14   : > { %v1519_v15 = vrot.slane %v371_v2, %v383_v6  ;;  %v1521_v16 = vrot.slane %v371_v2, %v387_v7  ;;  %v1523_v17 = vrot.slane %v521_v3, %v383_v6  ;;  %v1525_v18 = vrot.slane %v521_v3, %v387_v7  ;;  %v182_v19 = vld [vmem:[%s1506_s22 + $0x18] sm:$0xff]  ;;  %v183_v32 = vld [vmem:[%s1506_s22 + $0x20] sm:$0xff]  ;;  %v184_v45 = vld [vmem:[%s1506_s22 + $0x28] sm:$0xff] }
  0x15   : > { %v243_v20 = vunpack.c.l.bf16 %v179_v12  ;;  %v244_v21 = vunpack.c.h.bf16 %v179_v12  ;;  %v245_v22 = vunpack.c.l.bf16 %v180_v13  ;;  %v246_v23 = vunpack.c.h.bf16 %v180_v13  ;;  %v185_v50 = vld [vmem:[%s1506_s22 + $0x30] sm:$0xff]  ;;  %v186_v55 = vld [vmem:[%s1506_s22 + $0x38] sm:$0xff]  ;;  %v1560_v4 = vld [vmem:[%s1506_s22 + $0x40] sm:$0xff] }
  0x16   : > { %v247_v24 = vunpack.c.l.bf16 %v181_v14  ;;  %v248_v25 = vunpack.c.h.bf16 %v181_v14  ;;  %v249_v26 = vunpack.c.l.bf16 %v182_v19  ;;  %v250_v27 = vunpack.c.h.bf16 %v182_v19 }
  0x17   : > { %v393_v28 = vmul.f32 %v1508_v8, %v243_v20  ;;  %v394_v29 = vmul.f32 %v1510_v9, %v244_v21  ;;  %v395_v30 = vmul.f32 %v1519_v15, %v245_v22  ;;  %v396_v31 = vmul.f32 %v1521_v16, %v246_v23 }
  0x18   : > { %v397_v33 = vmul.f32 %v1508_v8, %v247_v24  ;;  %v398_v34 = vmul.f32 %v1510_v9, %v248_v25  ;;  %v399_v35 = vmul.f32 %v1519_v15, %v249_v26  ;;  %v400_v36 = vmul.f32 %v1521_v16, %v250_v27  ;;  %v1572_v25 = vld [vmem:[%s1506_s22 + $0x48] sm:$0xff] }
  0x19   : > { %v543_v37 = vadd.f32 %v1512_v10, %v393_v28  ;;  %v544_v38 = vadd.f32 %v1514_v11, %v394_v29  ;;  %v545_v39 = vadd.f32 %v1523_v17, %v395_v30  ;;  %v546_v40 = vadd.f32 %v1525_v18, %v396_v31 }
  0x1a   : > { %v547_v41 = vadd.f32 %v1512_v10, %v397_v33  ;;  %v548_v42 = vadd.f32 %v1514_v11, %v398_v34  ;;  %v549_v43 = vadd.f32 %v1523_v17, %v399_v35  ;;  %v550_v44 = vadd.f32 %v1525_v18, %v400_v36  ;;  %v1592_v34 = vld [vmem:[%s1506_s22 + $0x50] sm:$0xff] }
  0x1b   : > { %v671_v46 = vmax.f32 %v543_v37, 0.0  ;;  %v672_v47 = vmax.f32 %v544_v38, 0.0  ;;  %v673_v48 = vmax.f32 %v545_v39, 0.0  ;;  %v251_v49 = vunpack.c.l.bf16 %v183_v32  ;;  %v1601_v39 = vld [vmem:[%s1506_s22 + $0x58] sm:$0xff] }
  0x1c   : > { %v674_v51 = vmax.f32 %v546_v40, 0.0  ;;  %v675_v52 = vmax.f32 %v547_v41, 0.0  ;;  %v676_v53 = vmax.f32 %v548_v42, 0.0  ;;  %v252_v54 = vunpack.c.h.bf16 %v183_v32  ;;  %v1729_v41 = vld [vmem:[%s1506_s22 + $0x190] sm:$0xff] }
  0x1d   : > { %v1548_v56 = vpack.c.bf16 %v672_v47, %v671_v46  ;;  %v677_v57 = vmax.f32 %v549_v43, 0.0  ;;  %v678_v58 = vmax.f32 %v550_v44, 0.0  ;;  %v401_v59 = vmul.f32 %v1508_v8, %v251_v49  ;;  %v1615_v44 = vld [vmem:[%s1506_s22 + $0x60] sm:$0xff]  ;;  %v1621_v46 = vld [vmem:[%s1506_s22 + $0x70] sm:$0xff]  ;;  %v1624_v47 = vld [vmem:[%s1506_s22 + $0x78] sm:$0xff]  ;;  %2207 = vst [vmem:[#allocation10_spill] sm:$0xff] %v1729_v41 }
  0x1e   : > { %v1551_v60 = vpack.c.bf16 %v674_v51, %v673_v48  ;;  %v1553_v61 = vpack.c.bf16 %v676_v53, %v675_v52  ;;  %v402_v62 = vmul.f32 %v1510_v9, %v252_v54  ;;  %v253_v63 = vunpack.c.l.bf16 %v184_v45  ;;  %v1627_v48 = vld [vmem:[%s1506_s22 + $0x80] sm:$0xff]  ;;  %v1630_v49 = vld [vmem:[%s1506_s22 + $0x88] sm:$0xff]  ;;  %v1636_v51 = vld [vmem:[%s1506_s22 + $0x98] sm:$0xff] }
  0x1f   : > { %v1556_v0 = vpack.c.bf16 %v678_v58, %v677_v57  ;;  %v551_v1 = vadd.f32 %v1512_v10, %v401_v59  ;;  %v254_v2 = vunpack.c.h.bf16 %v184_v45  ;;  %v255_v3 = vunpack.c.l.bf16 %v185_v50  ;;  %v1618_v45 = vld [vmem:[%s1506_s22 + $0x68] sm:$0xff]  ;;  %v1639_v52 = vld [vmem:[%s1506_s22 + $0xa0] sm:$0xff]  ;;  %v1645_v54 = vld [vmem:[%s1506_s22 + $0xb0] sm:$0xff] }
  0x20   : > { %v552_v5 = vadd.f32 %v1514_v11, %v402_v62  ;;  %v403_v6 = vmul.f32 %v1519_v15, %v253_v63  ;;  %v256_v7 = vunpack.c.h.bf16 %v185_v50  ;;  %v257_v12 = vunpack.c.l.bf16 %v186_v55  ;;  %v1633_v50 = vld [vmem:[%s1506_s22 + $0x90] sm:$0xff]  ;;  %v1642_v53 = vld [vmem:[%s1506_s22 + $0xa8] sm:$0xff]  ;;  %v1651_v57 = vld [vmem:[%s1506_s22 + $0xc0] sm:$0xff] }
  0x21   : > { %v679_v13 = vmax.f32 %v551_v1, 0.0  ;;  %v404_v14 = vmul.f32 %v1521_v16, %v254_v2  ;;  %v405_v19 = vmul.f32 %v1508_v8, %v255_v3  ;;  %v258_v20 = vunpack.c.h.bf16 %v186_v55  ;;  %v1648_v55 = vld [vmem:[%s1506_s22 + $0xb8] sm:$0xff]  ;;  %v1654_v58 = vld [vmem:[%s1506_s22 + $0xc8] sm:$0xff]  ;;  %v1657_v59 = vld [vmem:[%s1506_s22 + $0xd0] sm:$0xff] }
  0x22   : > { %v680_v21 = vmax.f32 %v552_v5, 0.0  ;;  %v1567_v22 = vadd.f32 %v1523_v17, %v403_v6  ;;  %v406_v23 = vmul.f32 %v1510_v9, %v256_v7  ;;  %v407_v24 = vmul.f32 %v1519_v15, %v257_v12  ;;  %v1660_v62 = vld [vmem:[%s1506_s22 + $0xd8] sm:$0xff]  ;;  %v1663_v63 = vld [vmem:[%s1506_s22 + $0xe0] sm:$0xff]  ;;  %v1666_v1 = vld [vmem:[%s1506_s22 + $0xe8] sm:$0xff] }
  0x23   : > { %v1575_v26 = vadd.f32 %v1525_v18, %v404_v14  ;;  %v1578_v27 = vadd.f32 %v1512_v10, %v405_v19  ;;  %v408_v28 = vmul.f32 %v1521_v16, %v258_v20  ;;  %v259_v29 = vunpack.c.l.bf16 %v1560_v4  ;;  %v1669_v2 = vld [vmem:[%s1506_s22 + $0xf0] sm:$0xff]  ;;  %v1672_v3 = vld [vmem:[%s1506_s22 + $0xf8] sm:$0xff]  ;;  %v1678_v5 = vld [vmem:[%s1506_s22 + $0x108] sm:$0xff] }
  0x24   : > { %v1582_v30 = vpack.c.bf16 %v680_v21, %v679_v13  ;;  %v681_v31 = vmax.f32 %v1567_v22, 0.0  ;;  %v1586_v32 = vadd.f32 %v1514_v11, %v406_v23  ;;  %v1589_v33 = vadd.f32 %v1523_v17, %v407_v24  ;;  %v1681_v6 = vld [vmem:[%s1506_s22 + $0x110] sm:$0xff]  ;;  %v1684_v7 = vld [vmem:[%s1506_s22 + $0x118] sm:$0xff]  ;;  %v1687_v12 = vld [vmem:[%s1506_s22 + $0x120] sm:$0xff] }
  0x25   : > { %v682_v35 = vmax.f32 %v1575_v26, 0.0  ;;  %v683_v36 = vmax.f32 %v1578_v27, 0.0  ;;  %v1597_v37 = vadd.f32 %v1525_v18, %v408_v28  ;;  %v260_v38 = vunpack.c.h.bf16 %v1560_v4  ;;  %v1675_v4 = vld [vmem:[%s1506_s22 + $0x100] sm:$0xff]  ;;  %v1690_v13 = vld [vmem:[%s1506_s22 + $0x128] sm:$0xff]  ;;  %v1693_v14 = vld [vmem:[%s1506_s22 + $0x130] sm:$0xff] }
  0x26   : > { %v684_v40 = vmax.f32 %v1586_v32, 0.0  ;;  %v409_v42 = vmul.f32 %v1508_v8, %v259_v29  ;;  %v261_v43 = vunpack.c.l.bf16 %v1572_v25  ;;  %v1696_v19 = vld [vmem:[%s1506_s22 + $0x138] sm:$0xff]  ;;  %v1699_v20 = vld [vmem:[%s1506_s22 + $0x140] sm:$0xff]  ;;  %v1702_v21 = vld [vmem:[%s1506_s22 + $0x148] sm:$0xff] }
  0x27   : > { %v1705_v22 = vld [vmem:[%s1506_s22 + $0x150] sm:$0xff]  ;;  %v1708_v23 = vld [vmem:[%s1506_s22 + $0x158] sm:$0xff]  ;;  %v1711_v24 = vld [vmem:[%s1506_s22 + $0x160] sm:$0xff]  ;;  %v686_v41 = vmax.f32 %v1597_v37, 0.0  ;;  %v263_v37 = vunpack.c.l.bf16 %v1592_v34 }
  0x28   : > { %2199 = vst [vmem:[#allocation2_spill] sm:$0xff] %v1705_v22  ;;  %2200 = vst [vmem:[#allocation3_spill] sm:$0xff] %v1708_v23  ;;  %v1714_v26 = vld [vmem:[%s1506_s22 + $0x168] sm:$0xff]  ;;  %v1717_v27 = vld [vmem:[%s1506_s22 + $0x170] sm:$0xff] }
  0x29   : > { %2201 = vst [vmem:[#allocation4_spill] sm:$0xff] %v1711_v24  ;;  %2202 = vst [vmem:[#allocation5_spill] sm:$0xff] %v1714_v26  ;;  %v1720_v28 = vld [vmem:[%s1506_s22 + $0x178] sm:$0xff]  ;;  %v1723_v29 = vld [vmem:[%s1506_s22 + $0x180] sm:$0xff] }
  0x2a   : > { %2203 = vst [vmem:[#allocation6_spill] sm:$0xff] %v1717_v27  ;;  %2204 = vst [vmem:[#allocation7_spill] sm:$0xff] %v1720_v28  ;;  %v1726_v32 = vld [vmem:[%s1506_s22 + $0x188] sm:$0xff]  ;;  %v1732_v22 = vld [vmem:[%s1506_s22 + $0x198] sm:$0xff] }
  0x2b   : > { %2205 = vst [vmem:[#allocation8_spill] sm:$0xff] %v1723_v29  ;;  %2206 = vst [vmem:[#allocation9_spill] sm:$0xff] %v1726_v32  ;;  %v1735_v23 = vld [vmem:[%s1506_s22 + $0x1a0] sm:$0xff]  ;;  %v1738_v24 = vld [vmem:[%s1506_s22 + $0x1a8] sm:$0xff]  ;;  %v1389_v32 = vpack.c.bf16 %v682_v35, %v681_v31  ;;  %v559_v31 = vadd.f32 %v1512_v10, %v409_v42  ;;  %v411_v35 = vmul.f32 %v1519_v15, %v261_v43  ;;  %v264_v42 = vunpack.c.h.bf16 %v1592_v34 }
  0x2c   : > { %2208 = vst [vmem:[#allocation11_spill] sm:$0xff] %v1732_v22  ;;  %2209 = vst [vmem:[#allocation12_spill] sm:$0xff] %v1735_v23  ;;  %v1741_v26 = vld [vmem:[%s1506_s22 + $0x1b0] sm:$0xff]  ;;  %v1744_v27 = vld [vmem:[%s1506_s22 + $0x1b8] sm:$0xff]  ;;  %v410_v22 = vmul.f32 %v1510_v9, %v260_v38  ;;  %v262_v23 = vunpack.c.h.bf16 %v1572_v25  ;;  %v413_v43 = vmul.f32 %v1508_v8, %v263_v37 }
  0x2d   : > { %2210 = vst [vmem:[#allocation13_spill] sm:$0xff] %v1738_v24  ;;  %2211 = vst [vmem:[#allocation14_spill] sm:$0xff] %v1741_v26  ;;  %v1747_v28 = vld [vmem:[%s1506_s22 + $0x1c0] sm:$0xff]  ;;  %v1750_v29 = vld [vmem:[%s1506_s22 + $0x1c8] sm:$0xff] }
  0x2e   : > { %2212 = vst [vmem:[#allocation15_spill] sm:$0xff] %v1744_v27  ;;  %2213 = vst [vmem:[#allocation16_spill] sm:$0xff] %v1747_v28  ;;  %v1756_v24 = vld [vmem:[%s1506_s22 + $0x1d0] sm:$0xff]  ;;  %v1759_v26 = vld [vmem:[%s1506_s22 + $0x1d8] sm:$0xff]  ;;  %v1390_v28 = vpack.c.bf16 %v684_v40, %v683_v36  ;;  %v560_v36 = vadd.f32 %v1514_v11, %v410_v22  ;;  %v412_v40 = vmul.f32 %v1521_v16, %v262_v23  ;;  %v265_v22 = vunpack.c.l.bf16 %v1601_v39 }
  0x2f   : > { %2214 = vst [vmem:[#allocation17_spill] sm:$0xff] %v1756_v24  ;;  %2215 = vst [vmem:[#allocation18_spill] sm:$0xff] %v1759_v26  ;;  %v1762_v27 = vld [vmem:[%s1506_s22 + $0x1e0] sm:$0xff]  ;;  %v1768_v25 = vld [vmem:[%s1506_s22 + $0x1e8] sm:$0xff]  ;;  %v2217_v26 = vmax.f32 %v1589_v33, 0.0  ;;  %v687_v33 = vmax.f32 %v559_v31, 0.0 }
  0x30   : > { %2216 = vst [vmem:[#allocation19_spill] sm:$0xff] %v1762_v27  ;;  %v1771_v38 = vld [vmem:[%s1506_s22 + $0x1f0] sm:$0xff]  ;;  %v1774_v24 = vld [vmem:[%s1506_s22 + $0x1f8] sm:$0xff]  ;;  %v688_v34 = vmax.f32 %v560_v36, 0.0  ;;  %v415_v23 = vmul.f32 %v1519_v15, %v265_v22  ;;  %v268_v36 = vunpack.c.h.bf16 %v1615_v44 }
  0x31   : > { %v1391_v27 = vpack.c.bf16 %v686_v41, %v2217_v26  ;;  %1183 = vst [vmem:[%s1612_s25] sm:$0xff] %v1548_v56  ;;  %1184 = vst [vmem:[%s1612_s25 + $0x8] sm:$0xff] %v1551_v60  ;;  %v561_v41 = vadd.f32 %v1523_v17, %v411_v35  ;;  %v562_v56 = vadd.f32 %v1525_v18, %v412_v40  ;;  %v267_v26 = vunpack.c.l.bf16 %v1615_v44 }
  0x32   : > { %1185 = vst [vmem:[%s1612_s25 + $0x10] sm:$0xff] %v1553_v61  ;;  %1186 = vst [vmem:[%s1612_s25 + $0x18] sm:$0xff] %v1556_v0  ;;  %v414_v60 = vmul.f32 %v1510_v9, %v264_v42  ;;  %v266_v61 = vunpack.c.h.bf16 %v1601_v39  ;;  %v565_v37 = vadd.f32 %v1523_v17, %v415_v23  ;;  %v418_v22 = vmul.f32 %v1510_v9, %v268_v36 }
  0x33   : > { %1187 = vst [vmem:[%s1612_s25 + $0x20] sm:$0xff] %v1582_v30  ;;  %1188 = vst [vmem:[%s1612_s25 + $0x28] sm:$0xff] %v1389_v32  ;;  %v689_v0 = vmax.f32 %v561_v41, 0.0  ;;  %v563_v30 = vadd.f32 %v1512_v10, %v413_v43  ;;  %v690_v32 = vmax.f32 %v562_v56, 0.0  ;;  %v417_v39 = vmul.f32 %v1508_v8, %v267_v26 }
  0x34   : > { %1189 = vst [vmem:[%s1612_s25 + $0x30] sm:$0xff] %v1390_v28  ;;  %1190 = vst [vmem:[%s1612_s25 + $0x38] sm:$0xff] %v1391_v27  ;;  %v1392_v28 = vpack.c.bf16 %v688_v34, %v687_v33  ;;  %v564_v27 = vadd.f32 %v1514_v11, %v414_v60  ;;  %v416_v31 = vmul.f32 %v1521_v16, %v266_v61  ;;  %v269_v33 = vunpack.c.l.bf16 %v1618_v45 }
  0x35   : > { %v691_v35 = vmax.f32 %v563_v30, 0.0  ;;  %v1393_v40 = vpack.c.bf16 %v690_v32, %v689_v0  ;;  %v693_v43 = vmax.f32 %v565_v37, 0.0  ;;  %v567_v34 = vadd.f32 %v1512_v10, %v417_v39 }
  0x36   : > { %1191 = vst [vmem:[%s1612_s25 + $0x40] sm:$0xff] %v1392_v28  ;;  %v692_v42 = vmax.f32 %v564_v27, 0.0  ;;  %v566_v41 = vadd.f32 %v1525_v18, %v416_v31  ;;  %v270_v56 = vunpack.c.h.bf16 %v1618_v45  ;;  %v419_v61 = vmul.f32 %v1519_v15, %v269_v33 }
  0x37   : > { %1192 = vst [vmem:[%s1612_s25 + $0x48] sm:$0xff] %v1393_v40  ;;  %v271_v0 = vunpack.c.l.bf16 %v1621_v46  ;;  %v568_v30 = vadd.f32 %v1514_v11, %v418_v22  ;;  %v695_v23 = vmax.f32 %v567_v34, 0.0  ;;  %v272_v28 = vunpack.c.h.bf16 %v1621_v46 }
  0x38   : > { %v1394_v60 = vpack.c.bf16 %v692_v42, %v691_v35  ;;  %v694_v44 = vmax.f32 %v566_v41, 0.0  ;;  %v420_v26 = vmul.f32 %v1521_v16, %v270_v56  ;;  %v569_v27 = vadd.f32 %v1523_v17, %v419_v61 }
  0x39   : > { %v421_v45 = vmul.f32 %v1508_v8, %v271_v0  ;;  %v273_v31 = vunpack.c.l.bf16 %v1624_v47  ;;  %v696_v35 = vmax.f32 %v568_v30, 0.0  ;;  %v422_v36 = vmul.f32 %v1510_v9, %v272_v28 }
  0x3a   : > { %1193 = vst [vmem:[%s1612_s25 + $0x50] sm:$0xff] %v1394_v60  ;;  %v1395_v32 = vpack.c.bf16 %v694_v44, %v693_v43  ;;  %v570_v37 = vadd.f32 %v1525_v18, %v420_v26  ;;  %v274_v39 = vunpack.c.h.bf16 %v1624_v47  ;;  %v697_v40 = vmax.f32 %v569_v27, 0.0 }
  0x3b   : > { %v571_v46 = vadd.f32 %v1512_v10, %v421_v45  ;;  %v423_v42 = vmul.f32 %v1519_v15, %v273_v31  ;;  %v275_v41 = vunpack.c.l.bf16 %v1627_v48  ;;  %v1396_v33 = vpack.c.bf16 %v696_v35, %v695_v23 }
  0x3c   : > { %1194 = vst [vmem:[%s1612_s25 + $0x58] sm:$0xff] %v1395_v32  ;;  %v698_v43 = vmax.f32 %v570_v37, 0.0  ;;  %v572_v22 = vadd.f32 %v1514_v11, %v422_v36  ;;  %v424_v34 = vmul.f32 %v1521_v16, %v274_v39  ;;  %v276_v47 = vunpack.c.h.bf16 %v1627_v48 }
  0x3d   : > { %v699_v56 = vmax.f32 %v571_v46, 0.0  ;;  %v573_v60 = vadd.f32 %v1523_v17, %v423_v42  ;;  %v425_v44 = vmul.f32 %v1508_v8, %v275_v41  ;;  %1195 = vst [vmem:[%s1612_s25 + $0x60] sm:$0xff] %v1396_v33  ;;  %v277_v23 = vunpack.c.l.bf16 %v1630_v49 }
  0x3e   : > { %v1397_v61 = vpack.c.bf16 %v698_v43, %v697_v40  ;;  %v700_v0 = vmax.f32 %v572_v22, 0.0  ;;  %v574_v30 = vadd.f32 %v1525_v18, %v424_v34  ;;  %v426_v28 = vmul.f32 %v1510_v9, %v276_v47 }
  0x3f   : > { %v701_v26 = vmax.f32 %v573_v60, 0.0  ;;  %v575_v32 = vadd.f32 %v1512_v10, %v425_v44  ;;  %v278_v27 = vunpack.c.h.bf16 %v1630_v49  ;;  %v427_v31 = vmul.f32 %v1519_v15, %v277_v23 }
  0x40   : > { %1196 = vst [vmem:[%s1612_s25 + $0x68] sm:$0xff] %v1397_v61  ;;  %v1398_v45 = vpack.c.bf16 %v700_v0, %v699_v56  ;;  %v702_v48 = vmax.f32 %v574_v30, 0.0  ;;  %v279_v35 = vunpack.c.l.bf16 %v1633_v50  ;;  %v576_v37 = vadd.f32 %v1514_v11, %v426_v28 }
  0x41   : > { %v703_v36 = vmax.f32 %v575_v32, 0.0  ;;  %v428_v39 = vmul.f32 %v1521_v16, %v278_v27  ;;  %v280_v40 = vunpack.c.h.bf16 %v1633_v50  ;;  %v577_v42 = vadd.f32 %v1523_v17, %v427_v31 }
  0x42   : > { %1197 = vst [vmem:[%s1612_s25 + $0x70] sm:$0xff] %v1398_v45  ;;  %v1399_v46 = vpack.c.bf16 %v702_v48, %v701_v26  ;;  %v429_v49 = vmul.f32 %v1508_v8, %v279_v35  ;;  %v281_v41 = vunpack.c.l.bf16 %v1636_v51  ;;  %v704_v33 = vmax.f32 %v576_v37, 0.0 }
  0x43   : > { %v578_v43 = vadd.f32 %v1525_v18, %v428_v39  ;;  %v430_v22 = vmul.f32 %v1510_v9, %v280_v40  ;;  %v282_v34 = vunpack.c.h.bf16 %v1636_v51  ;;  %v705_v56 = vmax.f32 %v577_v42, 0.0 }
  0x44   : > { %1198 = vst [vmem:[%s1612_s25 + $0x78] sm:$0xff] %v1399_v46  ;;  %v579_v50 = vadd.f32 %v1512_v10, %v429_v49  ;;  %v431_v60 = vmul.f32 %v1519_v15, %v281_v41  ;;  %v283_v47 = vunpack.c.l.bf16 %v1639_v52  ;;  %v1400_v44 = vpack.c.bf16 %v704_v33, %v703_v36 }
  0x45   : > { %v706_v61 = vmax.f32 %v578_v43, 0.0  ;;  %v580_v0 = vadd.f32 %v1514_v11, %v430_v22  ;;  %v432_v30 = vmul.f32 %v1521_v16, %v282_v34  ;;  %v284_v51 = vunpack.c.h.bf16 %v1639_v52 }
  0x46   : > { %v707_v23 = vmax.f32 %v579_v50, 0.0  ;;  %v581_v26 = vadd.f32 %v1523_v17, %v431_v60  ;;  %v433_v28 = vmul.f32 %v1508_v8, %v283_v47  ;;  %1199 = vst [vmem:[%s1612_s25 + $0x80] sm:$0xff] %v1400_v44  ;;  %v285_v48 = vunpack.c.l.bf16 %v1642_v53 }
  0x47   : > { %v1401_v32 = vpack.c.bf16 %v706_v61, %v705_v56  ;;  %v708_v27 = vmax.f32 %v580_v0, 0.0  ;;  %v582_v45 = vadd.f32 %v1525_v18, %v432_v30  ;;  %v434_v35 = vmul.f32 %v1510_v9, %v284_v51 }
  0x48   : > { %v709_v31 = vmax.f32 %v581_v26, 0.0  ;;  %v583_v37 = vadd.f32 %v1512_v10, %v433_v28  ;;  %v286_v36 = vunpack.c.h.bf16 %v1642_v53  ;;  %v435_v40 = vmul.f32 %v1519_v15, %v285_v48 }
  0x49   : > { %1200 = vst [vmem:[%s1612_s25 + $0x88] sm:$0xff] %v1401_v32  ;;  %v1402_v39 = vpack.c.bf16 %v708_v27, %v707_v23  ;;  %v710_v52 = vmax.f32 %v582_v45, 0.0  ;;  %v287_v46 = vunpack.c.l.bf16 %v1645_v54  ;;  %v584_v42 = vadd.f32 %v1514_v11, %v434_v35 }
  0x4a   : > { %v711_v49 = vmax.f32 %v583_v37, 0.0  ;;  %v436_v41 = vmul.f32 %v1521_v16, %v286_v36  ;;  %v288_v33 = vunpack.c.h.bf16 %v1645_v54  ;;  %v585_v22 = vadd.f32 %v1523_v17, %v435_v40 }
  0x4b   : > { %1201 = vst [vmem:[%s1612_s25 + $0x90] sm:$0xff] %v1402_v39  ;;  %v1403_v43 = vpack.c.bf16 %v710_v52, %v709_v31  ;;  %v437_v53 = vmul.f32 %v1508_v8, %v287_v46  ;;  %v289_v34 = vunpack.c.l.bf16 %v1648_v55  ;;  %v712_v56 = vmax.f32 %v584_v42, 0.0 }
  0x4c   : > { %v586_v50 = vadd.f32 %v1525_v18, %v436_v41  ;;  %v438_v60 = vmul.f32 %v1510_v9, %v288_v33  ;;  %v290_v47 = vunpack.c.h.bf16 %v1648_v55  ;;  %v713_v44 = vmax.f32 %v585_v22, 0.0 }
  0x4d   : > { %1202 = vst [vmem:[%s1612_s25 + $0x98] sm:$0xff] %v1403_v43  ;;  %v587_v54 = vadd.f32 %v1512_v10, %v437_v53  ;;  %v439_v61 = vmul.f32 %v1519_v15, %v289_v34  ;;  %v291_v0 = vunpack.c.l.bf16 %v1651_v57  ;;  %v1404_v30 = vpack.c.bf16 %v712_v56, %v711_v49 }
  0x4e   : > { %v714_v23 = vmax.f32 %v586_v50, 0.0  ;;  %v588_v26 = vadd.f32 %v1514_v11, %v438_v60  ;;  %v440_v51 = vmul.f32 %v1521_v16, %v290_v47  ;;  %v292_v55 = vunpack.c.h.bf16 %v1651_v57 }
  0x4f   : > { %v715_v28 = vmax.f32 %v587_v54, 0.0  ;;  %v589_v32 = vadd.f32 %v1523_v17, %v439_v61  ;;  %v441_v27 = vmul.f32 %v1508_v8, %v291_v0  ;;  %1203 = vst [vmem:[%s1612_s25 + $0xa0] sm:$0xff] %v1404_v30  ;;  %v293_v35 = vunpack.c.l.bf16 %v1654_v58 }
  0x50   : > { %v1405_v45 = vpack.c.bf16 %v714_v23, %v713_v44  ;;  %v716_v48 = vmax.f32 %v588_v26, 0.0  ;;  %v590_v31 = vadd.f32 %v1525_v18, %v440_v51  ;;  %v442_v36 = vmul.f32 %v1510_v9, %v292_v55 }
  0x51   : > { %v717_v37 = vmax.f32 %v589_v32, 0.0  ;;  %v591_v39 = vadd.f32 %v1512_v10, %v441_v27  ;;  %v294_v52 = vunpack.c.h.bf16 %v1654_v58  ;;  %v443_v46 = vmul.f32 %v1519_v15, %v293_v35 }
  0x52   : > { %1204 = vst [vmem:[%s1612_s25 + $0xa8] sm:$0xff] %v1405_v45  ;;  %v1406_v40 = vpack.c.bf16 %v716_v48, %v715_v28  ;;  %v718_v57 = vmax.f32 %v590_v31, 0.0  ;;  %v295_v42 = vunpack.c.l.bf16 %v1657_v59  ;;  %v592_v49 = vadd.f32 %v1514_v11, %v442_v36 }
  0x53   : > { %v719_v41 = vmax.f32 %v591_v39, 0.0  ;;  %v444_v33 = vmul.f32 %v1521_v16, %v294_v52  ;;  %v296_v43 = vunpack.c.h.bf16 %v1657_v59  ;;  %v593_v53 = vadd.f32 %v1523_v17, %v443_v46 }
  0x54   : > { %1205 = vst [vmem:[%s1612_s25 + $0xb0] sm:$0xff] %v1406_v40  ;;  %v1407_v22 = vpack.c.bf16 %v718_v57, %v717_v37  ;;  %v445_v58 = vmul.f32 %v1508_v8, %v295_v42  ;;  %v297_v34 = vunpack.c.l.bf16 %v1660_v62  ;;  %v720_v56 = vmax.f32 %v592_v49, 0.0 }
  0x55   : > { %v594_v50 = vadd.f32 %v1525_v18, %v444_v33  ;;  %v446_v60 = vmul.f32 %v1510_v9, %v296_v43  ;;  %v298_v47 = vunpack.c.h.bf16 %v1660_v62  ;;  %v721_v44 = vmax.f32 %v593_v53, 0.0 }
  0x56   : > { %1206 = vst [vmem:[%s1612_s25 + $0xb8] sm:$0xff] %v1407_v22  ;;  %v595_v59 = vadd.f32 %v1512_v10, %v445_v58  ;;  %v447_v54 = vmul.f32 %v1519_v15, %v297_v34  ;;  %v299_v61 = vunpack.c.l.bf16 %v1663_v63  ;;  %v1408_v0 = vpack.c.bf16 %v720_v56, %v719_v41 }
  0x57   : > { %v722_v30 = vmax.f32 %v594_v50, 0.0  ;;  %v596_v23 = vadd.f32 %v1514_v11, %v446_v60  ;;  %v448_v26 = vmul.f32 %v1521_v16, %v298_v47  ;;  %v300_v62 = vunpack.c.h.bf16 %v1663_v63 }
  0x58   : > { %v723_v51 = vmax.f32 %v595_v59, 0.0  ;;  %v597_v28 = vadd.f32 %v1523_v17, %v447_v54  ;;  %v449_v32 = vmul.f32 %v1508_v8, %v299_v61  ;;  %1207 = vst [vmem:[%s1612_s25 + $0xc0] sm:$0xff] %v1408_v0  ;;  %v301_v48 = vunpack.c.l.bf16 %v1666_v1 }
  0x59   : > { %v1409_v55 = vpack.c.bf16 %v722_v30, %v721_v44  ;;  %v724_v27 = vmax.f32 %v596_v23, 0.0  ;;  %v598_v45 = vadd.f32 %v1525_v18, %v448_v26  ;;  %v450_v35 = vmul.f32 %v1510_v9, %v300_v62 }
  0x5a   : > { %v725_v31 = vmax.f32 %v597_v28, 0.0  ;;  %v599_v37 = vadd.f32 %v1512_v10, %v449_v32  ;;  %v302_v36 = vunpack.c.h.bf16 %v1666_v1  ;;  %v451_v52 = vmul.f32 %v1519_v15, %v301_v48 }
  0x5b   : > { %1208 = vst [vmem:[%s1612_s25 + $0xc8] sm:$0xff] %v1409_v55  ;;  %v1410_v39 = vpack.c.bf16 %v724_v27, %v723_v51  ;;  %v726_v63 = vmax.f32 %v598_v45, 0.0  ;;  %v303_v40 = vunpack.c.l.bf16 %v1669_v2  ;;  %v600_v57 = vadd.f32 %v1514_v11, %v450_v35 }
  0x5c   : > { %v727_v46 = vmax.f32 %v599_v37, 0.0  ;;  %v452_v42 = vmul.f32 %v1521_v16, %v302_v36  ;;  %v304_v49 = vunpack.c.h.bf16 %v1669_v2  ;;  %v601_v33 = vadd.f32 %v1523_v17, %v451_v52 }
  0x5d   : > { %1209 = vst [vmem:[%s1612_s25 + $0xd0] sm:$0xff] %v1410_v39  ;;  %v1411_v41 = vpack.c.bf16 %v726_v63, %v725_v31  ;;  %v453_v1 = vmul.f32 %v1508_v8, %v303_v40  ;;  %v305_v43 = vunpack.c.l.bf16 %v1672_v3  ;;  %v728_v22 = vmax.f32 %v600_v57, 0.0 }
  0x5e   : > { %v602_v53 = vadd.f32 %v1525_v18, %v452_v42  ;;  %v454_v58 = vmul.f32 %v1510_v9, %v304_v49  ;;  %v306_v34 = vunpack.c.h.bf16 %v1672_v3  ;;  %v729_v56 = vmax.f32 %v601_v33, 0.0 }
  0x5f   : > { %1210 = vst [vmem:[%s1612_s25 + $0xd8] sm:$0xff] %v1411_v41  ;;  %v603_v2 = vadd.f32 %v1512_v10, %v453_v1  ;;  %v455_v50 = vmul.f32 %v1519_v15, %v305_v43  ;;  %v307_v60 = vunpack.c.l.bf16 %v1675_v4  ;;  %v1412_v47 = vpack.c.bf16 %v728_v22, %v727_v46 }
  0x60   : > { %v730_v44 = vmax.f32 %v602_v53, 0.0  ;;  %v604_v59 = vadd.f32 %v1514_v11, %v454_v58  ;;  %v456_v54 = vmul.f32 %v1521_v16, %v306_v34  ;;  %v308_v3 = vunpack.c.h.bf16 %v1675_v4 }
  0x61   : > { %v731_v61 = vmax.f32 %v603_v2, 0.0  ;;  %v605_v0 = vadd.f32 %v1523_v17, %v455_v50  ;;  %v457_v30 = vmul.f32 %v1508_v8, %v307_v60  ;;  %1211 = vst [vmem:[%s1612_s25 + $0xe0] sm:$0xff] %v1412_v47  ;;  %v309_v28 = vunpack.c.l.bf16 %v1678_v5 }
  0x62   : > { %v1413_v23 = vpack.c.bf16 %v730_v44, %v729_v56  ;;  %v732_v26 = vmax.f32 %v604_v59, 0.0  ;;  %v606_v51 = vadd.f32 %v1525_v18, %v456_v54  ;;  %v458_v32 = vmul.f32 %v1510_v9, %v308_v3 }
  0x63   : > { %v733_v62 = vmax.f32 %v605_v0, 0.0  ;;  %v607_v55 = vadd.f32 %v1512_v10, %v457_v30  ;;  %v310_v27 = vunpack.c.h.bf16 %v1678_v5  ;;  %v459_v48 = vmul.f32 %v1519_v15, %v309_v28 }
  0x64   : > { %1212 = vst [vmem:[%s1612_s25 + $0xe8] sm:$0xff] %v1413_v23  ;;  %v1414_v45 = vpack.c.bf16 %v732_v26, %v731_v61  ;;  %v734_v4 = vmax.f32 %v606_v51, 0.0  ;;  %v311_v31 = vunpack.c.l.bf16 %v1681_v6  ;;  %v608_v35 = vadd.f32 %v1514_v11, %v458_v32 }
  0x65   : > { %v735_v37 = vmax.f32 %v607_v55, 0.0  ;;  %v460_v36 = vmul.f32 %v1521_v16, %v310_v27  ;;  %v312_v39 = vunpack.c.h.bf16 %v1681_v6  ;;  %v609_v52 = vadd.f32 %v1523_v17, %v459_v48 }
  0x66   : > { %1213 = vst [vmem:[%s1612_s25 + $0xf0] sm:$0xff] %v1414_v45  ;;  %v1415_v63 = vpack.c.bf16 %v734_v4, %v733_v62  ;;  %v461_v5 = vmul.f32 %v1508_v8, %v311_v31  ;;  %v313_v40 = vunpack.c.l.bf16 %v1684_v7  ;;  %v736_v57 = vmax.f32 %v608_v35, 0.0 }
  0x67   : > { %v610_v46 = vadd.f32 %v1525_v18, %v460_v36  ;;  %v462_v42 = vmul.f32 %v1510_v9, %v312_v39  ;;  %v314_v49 = vunpack.c.h.bf16 %v1684_v7  ;;  %v737_v41 = vmax.f32 %v609_v52, 0.0 }
  0x68   : > { %1214 = vst [vmem:[%s1612_s25 + $0xf8] sm:$0xff] %v1415_v63  ;;  %v611_v6 = vadd.f32 %v1512_v10, %v461_v5  ;;  %v463_v33 = vmul.f32 %v1519_v15, %v313_v40  ;;  %v315_v1 = vunpack.c.l.bf16 %v1687_v12  ;;  %v1416_v43 = vpack.c.bf16 %v736_v57, %v735_v37 }
  0x69   : > { %v738_v22 = vmax.f32 %v610_v46, 0.0  ;;  %v612_v53 = vadd.f32 %v1514_v11, %v462_v42  ;;  %v464_v58 = vmul.f32 %v1521_v16, %v314_v49  ;;  %v316_v7 = vunpack.c.h.bf16 %v1687_v12 }
  0x6a   : > { %v739_v34 = vmax.f32 %v611_v6, 0.0  ;;  %v613_v56 = vadd.f32 %v1523_v17, %v463_v33  ;;  %v465_v2 = vmul.f32 %v1508_v8, %v315_v1  ;;  %1215 = vst [vmem:[%s1612_s25 + $0x100] sm:$0xff] %v1416_v43  ;;  %v317_v44 = vunpack.c.l.bf16 %v1690_v13 }
  0x6b   : > { %v1417_v50 = vpack.c.bf16 %v738_v22, %v737_v41  ;;  %v740_v60 = vmax.f32 %v612_v53, 0.0  ;;  %v614_v47 = vadd.f32 %v1525_v18, %v464_v58  ;;  %v466_v54 = vmul.f32 %v1510_v9, %v316_v7 }
  0x6c   : > { %v741_v59 = vmax.f32 %v613_v56, 0.0  ;;  %v615_v61 = vadd.f32 %v1512_v10, %v465_v2  ;;  %v318_v0 = vunpack.c.h.bf16 %v1690_v13  ;;  %v467_v30 = vmul.f32 %v1519_v15, %v317_v44 }
  0x6d   : > { %1216 = vst [vmem:[%s1612_s25 + $0x108] sm:$0xff] %v1417_v50  ;;  %v1418_v3 = vpack.c.bf16 %v740_v60, %v739_v34  ;;  %v742_v12 = vmax.f32 %v614_v47, 0.0  ;;  %v319_v23 = vunpack.c.l.bf16 %v1693_v14  ;;  %v616_v26 = vadd.f32 %v1514_v11, %v466_v54  ;;  %v2218_v34 = vld [vmem:[#allocation2_spill] sm:$0xff] }
  0x6e   : > { %v743_v51 = vmax.f32 %v615_v61, 0.0  ;;  %v468_v28 = vmul.f32 %v1521_v16, %v318_v0  ;;  %v320_v62 = vunpack.c.h.bf16 %v1693_v14  ;;  %v617_v55 = vadd.f32 %v1523_v17, %v467_v30 }
  0x6f   : > { %1217 = vst [vmem:[%s1612_s25 + $0x110] sm:$0xff] %v1418_v3  ;;  %v1419_v32 = vpack.c.bf16 %v742_v12, %v741_v59  ;;  %v469_v13 = vmul.f32 %v1508_v8, %v319_v23  ;;  %v321_v27 = vunpack.c.l.bf16 %v1696_v19  ;;  %v744_v45 = vmax.f32 %v616_v26, 0.0  ;;  %v2219_v59 = vld [vmem:[#allocation3_spill] sm:$0xff] }
  0x70   : > { %v618_v4 = vadd.f32 %v1525_v18, %v468_v28  ;;  %v470_v48 = vmul.f32 %v1510_v9, %v320_v62  ;;  %v322_v31 = vunpack.c.h.bf16 %v1696_v19  ;;  %v745_v35 = vmax.f32 %v617_v55, 0.0 }
  0x71   : > { %1218 = vst [vmem:[%s1612_s25 + $0x118] sm:$0xff] %v1419_v32  ;;  %v619_v14 = vadd.f32 %v1512_v10, %v469_v13  ;;  %v471_v37 = vmul.f32 %v1519_v15, %v321_v27  ;;  %v323_v36 = vunpack.c.l.bf16 %v1699_v20  ;;  %v1420_v39 = vpack.c.bf16 %v744_v45, %v743_v51  ;;  %v2220_v51 = vld [vmem:[#allocation4_spill] sm:$0xff] }
  0x72   : > { %v746_v63 = vmax.f32 %v618_v4, 0.0  ;;  %v620_v52 = vadd.f32 %v1514_v11, %v470_v48  ;;  %v472_v5 = vmul.f32 %v1521_v16, %v322_v31  ;;  %v324_v19 = vunpack.c.h.bf16 %v1699_v20 }
  0x73   : > { %v747_v40 = vmax.f32 %v619_v14, 0.0  ;;  %v621_v57 = vadd.f32 %v1523_v17, %v471_v37  ;;  %v473_v46 = vmul.f32 %v1508_v8, %v323_v36  ;;  %1219 = vst [vmem:[%s1612_s25 + $0x120] sm:$0xff] %v1420_v39  ;;  %v325_v6 = vunpack.c.l.bf16 %v1702_v21  ;;  %v2221_v37 = vld [vmem:[#allocation5_spill] sm:$0xff] }
  0x74   : > { %v1421_v42 = vpack.c.bf16 %v746_v63, %v745_v35  ;;  %v748_v49 = vmax.f32 %v620_v52, 0.0  ;;  %v622_v41 = vadd.f32 %v1525_v18, %v472_v5  ;;  %v474_v1 = vmul.f32 %v1510_v9, %v324_v19 }
  0x75   : > { %v749_v33 = vmax.f32 %v621_v57, 0.0  ;;  %v623_v43 = vadd.f32 %v1512_v10, %v473_v46  ;;  %v326_v22 = vunpack.c.h.bf16 %v1702_v21  ;;  %v475_v58 = vmul.f32 %v1519_v15, %v325_v6  ;;  %v2222_v46 = vld [vmem:[#allocation6_spill] sm:$0xff] }
  0x76   : > { %1220 = vst [vmem:[%s1612_s25 + $0x128] sm:$0xff] %v1421_v42  ;;  %v1422_v53 = vpack.c.bf16 %v748_v49, %v747_v40  ;;  %v750_v20 = vmax.f32 %v622_v41, 0.0  ;;  %v327_v56 = vunpack.c.l.bf16 %v2218_v34  ;;  %v624_v7 = vadd.f32 %v1514_v11, %v474_v1 }
  0x77   : > { %v751_v2 = vmax.f32 %v623_v43, 0.0  ;;  %v476_v50 = vmul.f32 %v1521_v16, %v326_v22  ;;  %v328_v60 = vunpack.c.h.bf16 %v2218_v34  ;;  %v625_v44 = vadd.f32 %v1523_v17, %v475_v58 }
  0x78   : > { %1221 = vst [vmem:[%s1612_s25 + $0x130] sm:$0xff] %v1422_v53  ;;  %v1423_v47 = vpack.c.bf16 %v750_v20, %v749_v33  ;;  %v477_v21 = vmul.f32 %v1508_v8, %v327_v56  ;;  %v329_v54 = vunpack.c.l.bf16 %v2219_v59  ;;  %v752_v61 = vmax.f32 %v624_v7, 0.0  ;;  %v2223_v53 = vld [vmem:[#allocation7_spill] sm:$0xff] }
  0x79   : > { %v626_v0 = vadd.f32 %v1525_v18, %v476_v50  ;;  %v478_v3 = vmul.f32 %v1510_v9, %v328_v60  ;;  %v330_v12 = vunpack.c.h.bf16 %v2219_v59  ;;  %v753_v30 = vmax.f32 %v625_v44, 0.0 }
  0x7a   : > { %1222 = vst [vmem:[%s1612_s25 + $0x138] sm:$0xff] %v1423_v47  ;;  %v627_v23 = vadd.f32 %v1512_v10, %v477_v21  ;;  %v479_v26 = vmul.f32 %v1519_v15, %v329_v54  ;;  %v331_v28 = vunpack.c.l.bf16 %v2220_v51  ;;  %v1424_v62 = vpack.c.bf16 %v752_v61, %v751_v2  ;;  %v2224_v47 = vld [vmem:[#allocation8_spill] sm:$0xff] }
  0x7b   : > { %v754_v32 = vmax.f32 %v626_v0, 0.0  ;;  %v628_v55 = vadd.f32 %v1514_v11, %v478_v3  ;;  %v480_v13 = vmul.f32 %v1521_v16, %v330_v12  ;;  %v332_v4 = vunpack.c.h.bf16 %v2220_v51 }
  0x7c   : > { %v755_v27 = vmax.f32 %v627_v23, 0.0  ;;  %v629_v45 = vadd.f32 %v1523_v17, %v479_v26  ;;  %v481_v48 = vmul.f32 %v1508_v8, %v331_v28  ;;  %1223 = vst [vmem:[%s1612_s25 + $0x140] sm:$0xff] %v1424_v62  ;;  %v333_v36 = vunpack.c.l.bf16 %v2221_v37  ;;  %v2225_v28 = vld [vmem:[#allocation9_spill] sm:$0xff] }
  0x7d   : > { %v1425_v31 = vpack.c.bf16 %v754_v32, %v753_v30  ;;  %v756_v35 = vmax.f32 %v628_v55, 0.0  ;;  %v630_v14 = vadd.f32 %v1525_v18, %v480_v13  ;;  %v482_v63 = vmul.f32 %v1510_v9, %v332_v4 }
  0x7e   : > { %v757_v39 = vmax.f32 %v629_v45, 0.0  ;;  %v631_v52 = vadd.f32 %v1512_v10, %v481_v48  ;;  %v334_v5 = vunpack.c.h.bf16 %v2221_v37  ;;  %v483_v19 = vmul.f32 %v1519_v15, %v333_v36 }
  0x7f   : > { %1224 = vst [vmem:[%s1612_s25 + $0x148] sm:$0xff] %v1425_v31  ;;  %v1426_v40 = vpack.c.bf16 %v756_v35, %v755_v27  ;;  %v758_v57 = vmax.f32 %v630_v14, 0.0  ;;  %v335_v42 = vunpack.c.l.bf16 %v2222_v46  ;;  %v632_v49 = vadd.f32 %v1514_v11, %v482_v63  ;;  %v2226_v31 = vld [vmem:[#allocation10_spill] sm:$0xff] }
  0x80   : > { %v759_v41 = vmax.f32 %v631_v52, 0.0  ;;  %v484_v6 = vmul.f32 %v1521_v16, %v334_v5  ;;  %v336_v33 = vunpack.c.h.bf16 %v2222_v46  ;;  %v633_v43 = vadd.f32 %v1523_v17, %v483_v19 }
  0x81   : > { %1225 = vst [vmem:[%s1612_s25 + $0x150] sm:$0xff] %v1426_v40  ;;  %v1427_v1 = vpack.c.bf16 %v758_v57, %v757_v39  ;;  %v485_v22 = vmul.f32 %v1508_v8, %v335_v42  ;;  %v337_v20 = vunpack.c.l.bf16 %v2223_v53  ;;  %v760_v58 = vmax.f32 %v632_v49, 0.0  ;;  %v2227_v40 = vld [vmem:[#allocation11_spill] sm:$0xff] }
  0x82   : > { %v634_v34 = vadd.f32 %v1525_v18, %v484_v6  ;;  %v486_v56 = vmul.f32 %v1510_v9, %v336_v33  ;;  %v338_v7 = vunpack.c.h.bf16 %v2223_v53  ;;  %v761_v2 = vmax.f32 %v633_v43, 0.0 }
  0x83   : > { %1226 = vst [vmem:[%s1612_s25 + $0x158] sm:$0xff] %v1427_v1  ;;  %v635_v50 = vadd.f32 %v1512_v10, %v485_v22  ;;  %v487_v60 = vmul.f32 %v1519_v15, %v337_v20  ;;  %v339_v44 = vunpack.c.l.bf16 %v2224_v47  ;;  %v1428_v21 = vpack.c.bf16 %v760_v58, %v759_v41  ;;  %v2228_v1 = vld [vmem:[#allocation12_spill] sm:$0xff] }
  0x84   : > { %v762_v59 = vmax.f32 %v634_v34, 0.0  ;;  %v636_v54 = vadd.f32 %v1514_v11, %v486_v56  ;;  %v488_v61 = vmul.f32 %v1521_v16, %v338_v7  ;;  %v340_v12 = vunpack.c.h.bf16 %v2224_v47 }
  0x85   : > { %v763_v0 = vmax.f32 %v635_v50, 0.0  ;;  %v637_v3 = vadd.f32 %v1523_v17, %v487_v60  ;;  %v489_v30 = vmul.f32 %v1508_v8, %v339_v44  ;;  %1227 = vst [vmem:[%s1612_s25 + $0x160] sm:$0xff] %v1428_v21  ;;  %v341_v62 = vunpack.c.l.bf16 %v2225_v28  ;;  %v2229_v44 = vld [vmem:[#allocation13_spill] sm:$0xff] }
  0x86   : > { %v1429_v23 = vpack.c.bf16 %v762_v59, %v761_v2  ;;  %v764_v26 = vmax.f32 %v636_v54, 0.0  ;;  %v638_v51 = vadd.f32 %v1525_v18, %v488_v61  ;;  %v490_v55 = vmul.f32 %v1510_v9, %v340_v12 }
  0x87   : > { %v765_v32 = vmax.f32 %v637_v3, 0.0  ;;  %v639_v13 = vadd.f32 %v1512_v10, %v489_v30  ;;  %v342_v27 = vunpack.c.h.bf16 %v2225_v28  ;;  %v491_v48 = vmul.f32 %v1519_v15, %v341_v62 }
  0x88   : > { %1228 = vst [vmem:[%s1612_s25 + $0x168] sm:$0xff] %v1429_v23  ;;  %v1430_v45 = vpack.c.bf16 %v764_v26, %v763_v0  ;;  %v766_v4 = vmax.f32 %v638_v51, 0.0  ;;  %v343_v35 = vunpack.c.l.bf16 %v2226_v31  ;;  %v640_v14 = vadd.f32 %v1514_v11, %v490_v55  ;;  %v2230_v23 = vld [vmem:[#allocation14_spill] sm:$0xff] }
  0x89   : > { %v767_v37 = vmax.f32 %v639_v13, 0.0  ;;  %v492_v36 = vmul.f32 %v1521_v16, %v342_v27  ;;  %v344_v39 = vunpack.c.h.bf16 %v2226_v31  ;;  %v641_v52 = vadd.f32 %v1523_v17, %v491_v48 }
  0x8a   : > { %1229 = vst [vmem:[%s1612_s25 + $0x170] sm:$0xff] %v1430_v45  ;;  %v1431_v63 = vpack.c.bf16 %v766_v4, %v765_v32  ;;  %v493_v5 = vmul.f32 %v1508_v8, %v343_v35  ;;  %v345_v57 = vunpack.c.l.bf16 %v2227_v40  ;;  %v768_v19 = vmax.f32 %v640_v14, 0.0  ;;  %v2231_v45 = vld [vmem:[#allocation15_spill] sm:$0xff] }
  0x8b   : > { %v642_v46 = vadd.f32 %v1525_v18, %v492_v36  ;;  %v494_v42 = vmul.f32 %v1510_v9, %v344_v39  ;;  %v346_v49 = vunpack.c.h.bf16 %v2227_v40  ;;  %v769_v41 = vmax.f32 %v641_v52, 0.0 }
  0x8c   : > { %1230 = vst [vmem:[%s1612_s25 + $0x178] sm:$0xff] %v1431_v63  ;;  %v643_v6 = vadd.f32 %v1512_v10, %v493_v5  ;;  %v495_v33 = vmul.f32 %v1519_v15, %v345_v57  ;;  %v347_v43 = vunpack.c.l.bf16 %v2228_v1  ;;  %v1432_v22 = vpack.c.bf16 %v768_v19, %v767_v37  ;;  %v2232_v63 = vld [vmem:[#allocation16_spill] sm:$0xff] }
  0x8d   : > { %v770_v53 = vmax.f32 %v642_v46, 0.0  ;;  %v644_v20 = vadd.f32 %v1514_v11, %v494_v42  ;;  %v496_v58 = vmul.f32 %v1521_v16, %v346_v49  ;;  %v348_v7 = vunpack.c.h.bf16 %v2228_v1 }
  0x8e   : > { %v771_v34 = vmax.f32 %v643_v6, 0.0  ;;  %v645_v56 = vadd.f32 %v1523_v17, %v495_v33  ;;  %v497_v2 = vmul.f32 %v1508_v8, %v347_v43  ;;  %1231 = vst [vmem:[%s1612_s25 + $0x180] sm:$0xff] %v1432_v22  ;;  %v349_v21 = vunpack.c.l.bf16 %v2229_v44 }
  0x8f   : > { %v1433_v50 = vpack.c.bf16 %v770_v53, %v769_v41  ;;  %v772_v60 = vmax.f32 %v644_v20, 0.0  ;;  %v646_v47 = vadd.f32 %v1525_v18, %v496_v58  ;;  %v498_v54 = vmul.f32 %v1510_v9, %v348_v7 }
  0x90   : > { %v773_v59 = vmax.f32 %v645_v56, 0.0  ;;  %v647_v61 = vadd.f32 %v1512_v10, %v497_v2  ;;  %v350_v0 = vunpack.c.h.bf16 %v2229_v44  ;;  %v499_v30 = vmul.f32 %v1519_v15, %v349_v21  ;;  %v2233_v2 = vld [vmem:[#allocation17_spill] sm:$0xff] }
  0x91   : > { %1232 = vst [vmem:[%s1612_s25 + $0x188] sm:$0xff] %v1433_v50  ;;  %v1434_v3 = vpack.c.bf16 %v772_v60, %v771_v34  ;;  %v774_v12 = vmax.f32 %v646_v47, 0.0  ;;  %v351_v26 = vunpack.c.l.bf16 %v2230_v23  ;;  %v648_v51 = vadd.f32 %v1514_v11, %v498_v54 }
  0x92   : > { %v775_v28 = vmax.f32 %v647_v61, 0.0  ;;  %v500_v62 = vmul.f32 %v1521_v16, %v350_v0  ;;  %v352_v32 = vunpack.c.h.bf16 %v2230_v23  ;;  %v649_v13 = vadd.f32 %v1523_v17, %v499_v30  ;;  %v2234_v61 = vld [vmem:[#allocation18_spill] sm:$0xff] }
  0x93   : > { %1233 = vst [vmem:[%s1612_s25 + $0x190] sm:$0xff] %v1434_v3  ;;  %v1435_v55 = vpack.c.bf16 %v774_v12, %v773_v59  ;;  %v501_v27 = vmul.f32 %v1508_v8, %v351_v26  ;;  %v353_v4 = vunpack.c.l.bf16 %v2231_v45  ;;  %v776_v48 = vmax.f32 %v648_v51, 0.0 }
  0x94   : > { %v650_v31 = vadd.f32 %v1525_v18, %v500_v62  ;;  %v502_v35 = vmul.f32 %v1510_v9, %v352_v32  ;;  %v354_v14 = vunpack.c.h.bf16 %v2231_v45  ;;  %v777_v37 = vmax.f32 %v649_v13, 0.0  ;;  %v2235_v62 = vld [vmem:[#allocation19_spill] sm:$0xff] }
  0x95   : > { %1234 = vst [vmem:[%s1612_s25 + $0x198] sm:$0xff] %v1435_v55  ;;  %v651_v36 = vadd.f32 %v1512_v10, %v501_v27  ;;  %v503_v39 = vmul.f32 %v1519_v15, %v353_v4  ;;  %v355_v52 = vunpack.c.l.bf16 %v2232_v63  ;;  %v1436_v5 = vpack.c.bf16 %v776_v48, %v775_v28 }
  0x96   : > { %v778_v40 = vmax.f32 %v650_v31, 0.0  ;;  %v652_v57 = vadd.f32 %v1514_v11, %v502_v35  ;;  %v504_v19 = vmul.f32 %v1521_v16, %v354_v14  ;;  %v356_v49 = vunpack.c.h.bf16 %v2232_v63 }
  0x97   : > { %v779_v46 = vmax.f32 %v651_v36, 0.0  ;;  %v653_v42 = vadd.f32 %v1523_v17, %v503_v39  ;;  %v505_v41 = vmul.f32 %v1508_v8, %v355_v52  ;;  %1235 = vst [vmem:[%s1612_s25 + $0x1a0] sm:$0xff] %v1436_v5  ;;  %v357_v43 = vunpack.c.l.bf16 %v1750_v29 }
  0x98   : > { %v1437_v6 = vpack.c.bf16 %v778_v40, %v777_v37  ;;  %v780_v33 = vmax.f32 %v652_v57, 0.0  ;;  %v654_v1 = vadd.f32 %v1525_v18, %v504_v19  ;;  %v506_v53 = vmul.f32 %v1510_v9, %v356_v49 }
  0x99   : > { %v781_v22 = vmax.f32 %v653_v42, 0.0  ;;  %v655_v20 = vadd.f32 %v1512_v10, %v505_v41  ;;  %v358_v58 = vunpack.c.h.bf16 %v1750_v29  ;;  %v507_v7 = vmul.f32 %v1519_v15, %v357_v43 }
  0x9a   : > { %1236 = vst [vmem:[%s1612_s25 + $0x1a8] sm:$0xff] %v1437_v6  ;;  %v1438_v34 = vpack.c.bf16 %v780_v33, %v779_v46  ;;  %v782_v56 = vmax.f32 %v654_v1, 0.0  ;;  %v359_v50 = vunpack.c.l.bf16 %v2233_v2  ;;  %v656_v60 = vadd.f32 %v1514_v11, %v506_v53 }
  0x9b   : > { %v783_v47 = vmax.f32 %v655_v20, 0.0  ;;  %v508_v44 = vmul.f32 %v1521_v16, %v358_v58  ;;  %v360_v21 = vunpack.c.h.bf16 %v2233_v2  ;;  %v657_v54 = vadd.f32 %v1523_v17, %v507_v7 }
  0x9c   : > { %1237 = vst [vmem:[%s1612_s25 + $0x1b0] sm:$0xff] %v1438_v34  ;;  %v1439_v59 = vpack.c.bf16 %v782_v56, %v781_v22  ;;  %v509_v29 = vmul.f32 %v1508_v8, %v359_v50  ;;  %v361_v0 = vunpack.c.l.bf16 %v2234_v61  ;;  %v784_v3 = vmax.f32 %v656_v60, 0.0 }
  0x9d   : > { %v658_v12 = vadd.f32 %v1525_v18, %v508_v44  ;;  %v510_v30 = vmul.f32 %v1510_v9, %v360_v21  ;;  %v362_v23 = vunpack.c.h.bf16 %v2234_v61  ;;  %v785_v26 = vmax.f32 %v657_v54, 0.0 }
  0x9e   : > { %1238 = vst [vmem:[%s1612_s25 + $0x1b8] sm:$0xff] %v1439_v59  ;;  %v659_v51 = vadd.f32 %v1512_v10, %v509_v29  ;;  %v511_v28 = vmul.f32 %v1519_v15, %v361_v0  ;;  %v363_v32 = vunpack.c.l.bf16 %v2235_v62  ;;  %v1440_v55 = vpack.c.bf16 %v784_v3, %v783_v47 }
  0x9f   : > { %v786_v13 = vmax.f32 %v658_v12, 0.0  ;;  %v660_v27 = vadd.f32 %v1514_v11, %v510_v30  ;;  %v512_v45 = vmul.f32 %v1521_v16, %v362_v23  ;;  %v364_v31 = vunpack.c.h.bf16 %v2235_v62 }
  0xa0   : > { %v787_v4 = vmax.f32 %v659_v51, 0.0  ;;  %v661_v48 = vadd.f32 %v1523_v17, %v511_v28  ;;  %v513_v35 = vmul.f32 %v1508_v8, %v363_v32  ;;  %1239 = vst [vmem:[%s1612_s25 + $0x1c0] sm:$0xff] %v1440_v55  ;;  %v365_v39 = vunpack.c.l.bf16 %v1768_v25 }
  0xa1   : > { %v1441_v14 = vpack.c.bf16 %v786_v13, %v785_v26  ;;  %v788_v37 = vmax.f32 %v660_v27, 0.0  ;;  %v662_v36 = vadd.f32 %v1525_v18, %v512_v45  ;;  %v514_v52 = vmul.f32 %v1510_v9, %v364_v31 }
  0xa2   : > { %v789_v63 = vmax.f32 %v661_v48, 0.0  ;;  %v663_v5 = vadd.f32 %v1512_v10, %v513_v35  ;;  %v366_v40 = vunpack.c.h.bf16 %v1768_v25  ;;  %v515_v46 = vmul.f32 %v1519_v15, %v365_v39 }
  0xa3   : > { %1240 = vst [vmem:[%s1612_s25 + $0x1c8] sm:$0xff] %v1441_v14  ;;  %v1442_v57 = vpack.c.bf16 %v788_v37, %v787_v4  ;;  %v790_v19 = vmax.f32 %v662_v36, 0.0  ;;  %v367_v42 = vunpack.c.l.bf16 %v1771_v38  ;;  %v664_v49 = vadd.f32 %v1514_v11, %v514_v52 }
  0xa4   : > { %v791_v41 = vmax.f32 %v663_v5, 0.0  ;;  %v516_v6 = vmul.f32 %v1521_v16, %v366_v40  ;;  %v368_v33 = vunpack.c.h.bf16 %v1771_v38  ;;  %v665_v43 = vadd.f32 %v1523_v17, %v515_v46 }
  0xa5   : > { %1241 = vst [vmem:[%s1612_s25 + $0x1d0] sm:$0xff] %v1442_v57  ;;  %v1443_v1 = vpack.c.bf16 %v790_v19, %v789_v63  ;;  %v517_v25 = vmul.f32 %v1508_v8, %v367_v42  ;;  %v369_v22 = vunpack.c.l.bf16 %v1774_v24  ;;  %v792_v53 = vmax.f32 %v664_v49, 0.0 }
  0xa6   : > { %v666_v20 = vadd.f32 %v1525_v18, %v516_v6  ;;  %v518_v58 = vmul.f32 %v1510_v9, %v368_v33  ;;  %v370_v34 = vunpack.c.h.bf16 %v1774_v24  ;;  %v793_v56 = vmax.f32 %v665_v43, 0.0 }
  0xa7   : > { %1242 = vst [vmem:[%s1612_s25 + $0x1d8] sm:$0xff] %v1443_v1  ;;  %v667_v38 = vadd.f32 %v1512_v10, %v517_v25  ;;  %v519_v7 = vmul.f32 %v1519_v15, %v369_v22  ;;  %v1444_v2 = vpack.c.bf16 %v792_v53, %v791_v41 }
  0xa8   : > { %v794_v8 = vmax.f32 %v666_v20, 0.0  ;;  %v668_v50 = vadd.f32 %v1514_v11, %v518_v58  ;;  %v520_v60 = vmul.f32 %v1521_v16, %v370_v34 }
  0xa9   : > { %v795_v47 = vmax.f32 %v667_v38, 0.0  ;;  %v669_v9 = vadd.f32 %v1523_v17, %v519_v7  ;;  %1243 = vst [vmem:[%s1612_s25 + $0x1e0] sm:$0xff] %v1444_v2 }
  0xaa   : > { %v1445_v24 = vpack.c.bf16 %v794_v8, %v793_v56  ;;  %v796_v44 = vmax.f32 %v668_v50, 0.0  ;;  %v670_v21 = vadd.f32 %v1525_v18, %v520_v60 }
  0xab   : > { %v797_v59 = vmax.f32 %v669_v9, 0.0 }
  0xac   : > { %1244 = vst [vmem:[%s1612_s25 + $0x1e8] sm:$0xff] %v1445_v24  ;;  %v1446_v10 = vpack.c.bf16 %v796_v44, %v795_v47  ;;  %v798_v54 = vmax.f32 %v670_v21, 0.0 }
  0xae   : > { %1245 = vst [vmem:[%s1612_s25 + $0x1f0] sm:$0xff] %v1446_v10  ;;  %v1447_v15 = vpack.c.bf16 %v798_v54, %v797_v59 }
  0xb0   : > { %1246 = vst [vmem:[%s1612_s25 + $0x1f8] sm:$0xff] %v1447_v15 }
  0xb1 PF: > { %s13_s12 = sadd.s32 1, %s1462_s12  }
  0xb2   : > { %p10_p4 = scmp.ge.s32.totalorder %s13_s12, 4  }
  0xb4   :  { %12 = sbr.rel (!%p10_p4) target bundleno = 1 (0x1), region = 62 }

</bundles_post_ra>
